<compile_context>
chip_gen: v7x
topology: tpu7x:2x2x1
jax: 0.10.0
libtpu: 0.0.40
codegen_flags: <defaults>
</compile_context>

<pallas_src>
import math
import functools

import jax
import jax.numpy as jnp
from jax.experimental import pallas as pl
from jax.experimental.pallas import tpu as pltpu

NEG_INF = -1e30          # additive-mask value (zero prob after softmax)
LN_EPS = 1e-5
APPROX_RECIPROCAL = True  # ~1e-3-level softmax-normalization error; fine for inference

_TM_CAP = 512
_TN_CAP = 1024
_VMEM_LIMIT = 32 * 1024 * 1024   # explicit scoped-VMEM budget (safe on all generations)


def _tile_m(M, cap=_TM_CAP):
    """Row-tile size: biggest tile <= cap, but keep >=2 tiles when cheaply possible
    so both v7x TensorCores get a 'parallel' block."""
    if M > cap:
        return cap
    if M >= 16 and M % 16 == 0:
        return M // 2
    return M


# ----------------------------------------------------------------------------
# Pallas kernels
# ----------------------------------------------------------------------------
def _linear_kernel(x_ref, w_ref, b_ref, o_ref):
    # (tm, K) @ (K, tn) + (1, tn)  -- bf16 inputs, fp32 accumulation
    y = jnp.dot(x_ref[...], w_ref[...], preferred_element_type=jnp.float32)
    o_ref[...] = (y + b_ref[...]).astype(o_ref.dtype)


def _layer_norm(z, g, beta):
    mu = jnp.mean(z, axis=-1, keepdims=True)
    var = jnp.mean((z - mu) * (z - mu), axis=-1, keepdims=True)
    return (z - mu) * jax.lax.rsqrt(var + LN_EPS) * g + beta


def _causal_mask(S):
    rows = jax.lax.broadcasted_iota(jnp.int32, (S, S), 0)
    cols = jax.lax.broadcasted_iota(jnp.int32, (S, S), 1)
    return jnp.where(cols > rows, NEG_INF, 0.0)


def _attn_heads_into(q, k, v, mask, nhead, out_scratch):
    """q,k,v: (S,D) fp32, mask: (S,S) fp32 additive.  Writes per-head (S,Dh) fp32
    results into out_scratch (S,D) at their lane offset (no concatenate, bounded
    live ranges)."""
    S, D = q.shape
    Dh = D // nhead
    scale = 1.0 / math.sqrt(Dh)
    for h in range(nhead):
        sl = slice(h * Dh, (h + 1) * Dh)
        qh = (q[:, sl] * scale).astype(jnp.bfloat16)
        kh = k[:, sl].astype(jnp.bfloat16)
        vh = v[:, sl].astype(jnp.bfloat16)
        # q @ k^T without an explicit transpose (contract last dims)
        s = jax.lax.dot_general(qh, kh, (((1,), (1,)), ((), ())),
                                preferred_element_type=jnp.float32)
        s = s + mask
        s = s - jnp.max(s, axis=-1, keepdims=True)
        p = jnp.exp(s)
        denom = jnp.sum(p, axis=-1, keepdims=True)
        p = p * pl.reciprocal(denom, approx=APPROX_RECIPROCAL)    # EUP, not VALU divide
        out_scratch[:, sl] = jnp.dot(p.astype(jnp.bfloat16), vh,
                                     preferred_element_type=jnp.float32)


def _self_attn_layer_kernel(x_ref, pad_ref, wqkv_ref, bqkv_ref,
                            wo_ref, bo_ref, g_ref, beta_ref,
                            o_ref, attn_sc, *, nhead, d_model):
    """Fused self-attention block for one batch element:
       out = LayerNorm(x + MHA(x; causal+pad mask) @ Wo + bo)."""
    S = x_ref.shape[1]
    D = d_model
    x = x_ref[0]                                                    # (S, D) bf16

    qkv = jnp.dot(x, wqkv_ref[...],
                  preferred_element_type=jnp.float32) + bqkv_ref[...]   # (S, 3D) f32
    q = qkv[:, :D]
    k = qkv[:, D:2 * D]
    v = qkv[:, 2 * D:]

    # additive mask: causal (built in-register) + key-padding row vector
    mask = _causal_mask(S) + pad_ref[0]                             # (S,S) + (1,S)
    _attn_heads_into(q, k, v, mask, nhead, attn_sc)

    a = attn_sc[...].astype(jnp.bfloat16)                           # (S, D)
    y = jnp.dot(a, wo_ref[...], preferred_element_type=jnp.float32) + bo_ref[...]
    z = x.astype(jnp.float32) + y
    o_ref[0] = _layer_norm(z, g_ref[...], beta_ref[...]).astype(o_ref.dtype)


def _cross_attn_layer_kernel(x_ref, mem_ref, wq_ref, bq_ref, wkv_ref, bkv_ref,
                             wo_ref, bo_ref, g_ref, beta_ref,
                             o_ref, attn_sc, *, nhead, d_model):
    """Fused cross-attention block for one batch element:
       out = LayerNorm(x + MHA(q=x, kv=memory; causal memory_mask) @ Wo + bo).
       (The reference module passes memory_mask=tgt_mask and no
       memory_key_padding_mask, so only the causal mask applies here.)"""
    S = x_ref.shape[1]
    D = d_model
    x = x_ref[0]                                                    # (S, D) bf16
    mem = mem_ref[0]                                                # (S, D) bf16

    q = jnp.dot(x, wq_ref[...], preferred_element_type=jnp.float32) + bq_ref[...]
    kv = jnp.dot(mem, wkv_ref[...],
                 preferred_element_type=jnp.float32) + bkv_ref[...]     # (S, 2D) f32
    k = kv[:, :D]
    v = kv[:, D:]

    mask = _causal_mask(S)
    _attn_heads_into(q, k, v, mask, nhead, attn_sc)

    a = attn_sc[...].astype(jnp.bfloat16)
    y = jnp.dot(a, wo_ref[...], preferred_element_type=jnp.float32) + bo_ref[...]
    z = x.astype(jnp.float32) + y
    o_ref[0] = _layer_norm(z, g_ref[...], beta_ref[...]).astype(o_ref.dtype)


def _ffn_add_ln_kernel(x_ref, w1_ref, b1_ref, w2_ref, b2_ref,
                       g_ref, beta_ref, o_ref):
    # out = LayerNorm(x + relu(x @ w1 + b1) @ w2 + b2)  -- hidden never leaves VMEM
    x = x_ref[...]
    h = jnp.dot(x, w1_ref[...], preferred_element_type=jnp.float32) + b1_ref[...]
    h = jnp.maximum(h, 0.0).astype(w2_ref.dtype)
    y = jnp.dot(h, w2_ref[...], preferred_element_type=jnp.float32) + b2_ref[...]
    z = x.astype(jnp.float32) + y
    o_ref[...] = _layer_norm(z, g_ref[...], beta_ref[...]).astype(o_ref.dtype)


# ----------------------------------------------------------------------------
# Pallas wrappers
# ----------------------------------------------------------------------------
def pallas_linear(x2d, w, b, *, out_dtype=None):
    """x2d: (M, K), w: (K, N) pre-transposed, b: (1, N) fp32 -> (M, N).
    M is the innermost grid axis so each (K, tn) weight block is DMA'd once and
    streamed over all M tiles."""
    M, K = x2d.shape
    N = w.shape[1]
    out_dtype = out_dtype or x2d.dtype
    tm = _tile_m(M)
    tn = min(N, _TN_CAP)
    return pl.pallas_call(
        _linear_kernel,
        out_shape=jax.ShapeDtypeStruct((M, N), out_dtype),
        grid=(pl.cdiv(N, tn), pl.cdiv(M, tm)),
        in_specs=[pl.BlockSpec((tm, K), lambda j, i: (i, 0)),
                  pl.BlockSpec((K, tn), lambda j, i: (0, j)),
                  pl.BlockSpec((1, tn), lambda j, i: (0, j))],
        out_specs=pl.BlockSpec((tm, tn), lambda j, i: (i, j)),
        compiler_params=pltpu.CompilerParams(
            dimension_semantics=("parallel", "parallel"),
            vmem_limit_bytes=_VMEM_LIMIT),
    )(x2d, w, b)


def pallas_self_attn_layer(x, pad, wqkv, bqkv, wo, bo, g, beta, *, nhead):
    """x: (B,S,D) bf16, pad: (B,1,S) fp32 additive key-padding -> (B,S,D)."""
    B, S, D = x.shape
    kern = functools.partial(_self_attn_layer_kernel, nhead=nhead, d_model=D)
    return pl.pallas_call(
        kern,
        out_shape=jax.ShapeDtypeStruct((B, S, D), x.dtype),
        grid=(B,),
        in_specs=[pl.BlockSpec((1, S, D), lambda b: (b, 0, 0)),
                  pl.BlockSpec((1, 1, S), lambda b: (b, 0, 0)),
                  pl.BlockSpec((D, 3 * D), lambda b: (0, 0)),
                  pl.BlockSpec((1, 3 * D), lambda b: (0, 0)),
                  pl.BlockSpec((D, D), lambda b: (0, 0)),
                  pl.BlockSpec((1, D), lambda b: (0, 0)),
                  pl.BlockSpec((1, D), lambda b: (0, 0)),
                  pl.BlockSpec((1, D), lambda b: (0, 0))],
        out_specs=pl.BlockSpec((1, S, D), lambda b: (b, 0, 0)),
        scratch_shapes=[pltpu.VMEM((S, D), jnp.float32)],
        compiler_params=pltpu.CompilerParams(
            dimension_semantics=("parallel",),
            vmem_limit_bytes=_VMEM_LIMIT),
    )(x, pad, wqkv, bqkv, wo, bo, g, beta)


def pallas_cross_attn_layer(x, memory, wq, bq, wkv, bkv, wo, bo, g, beta, *, nhead):
    """x, memory: (B,S,D) bf16 -> (B,S,D)."""
    B, S, D = x.shape
    kern = functools.partial(_cross_attn_layer_kernel, nhead=nhead, d_model=D)
    return pl.pallas_call(
        kern,
        out_shape=jax.ShapeDtypeStruct((B, S, D), x.dtype),
        grid=(B,),
        in_specs=[pl.BlockSpec((1, S, D), lambda b: (b, 0, 0)),
                  pl.BlockSpec((1, S, D), lambda b: (b, 0, 0)),
                  pl.BlockSpec((D, D), lambda b: (0, 0)),
                  pl.BlockSpec((1, D), lambda b: (0, 0)),
                  pl.BlockSpec((D, 2 * D), lambda b: (0, 0)),
                  pl.BlockSpec((1, 2 * D), lambda b: (0, 0)),
                  pl.BlockSpec((D, D), lambda b: (0, 0)),
                  pl.BlockSpec((1, D), lambda b: (0, 0)),
                  pl.BlockSpec((1, D), lambda b: (0, 0)),
                  pl.BlockSpec((1, D), lambda b: (0, 0))],
        out_specs=pl.BlockSpec((1, S, D), lambda b: (b, 0, 0)),
        scratch_shapes=[pltpu.VMEM((S, D), jnp.float32)],
        compiler_params=pltpu.CompilerParams(
            dimension_semantics=("parallel",),
            vmem_limit_bytes=_VMEM_LIMIT),
    )(x, memory, wq, bq, wkv, bkv, wo, bo, g, beta)


def pallas_ffn_add_ln(x2d, w1, b1, w2, b2, g, beta):
    """LayerNorm(x + relu(x @ w1 + b1) @ w2 + b2), tiled over M."""
    M, D = x2d.shape
    F = w1.shape[1]
    tm = _tile_m(M)
    return pl.pallas_call(
        _ffn_add_ln_kernel,
        out_shape=jax.ShapeDtypeStruct((M, D), x2d.dtype),
        grid=(pl.cdiv(M, tm),),
        in_specs=[pl.BlockSpec((tm, D), lambda i: (i, 0)),
                  pl.BlockSpec((D, F), lambda i: (0, 0)),
                  pl.BlockSpec((1, F), lambda i: (0, 0)),
                  pl.BlockSpec((F, D), lambda i: (0, 0)),
                  pl.BlockSpec((1, D), lambda i: (0, 0)),
                  pl.BlockSpec((1, D), lambda i: (0, 0)),
                  pl.BlockSpec((1, D), lambda i: (0, 0))],
        out_specs=pl.BlockSpec((tm, D), lambda i: (i, 0)),
        compiler_params=pltpu.CompilerParams(
            dimension_semantics=("parallel",),
            vmem_limit_bytes=_VMEM_LIMIT),
    )(x2d, w1, b1, w2, b2, g, beta)


# ----------------------------------------------------------------------------
# Model pieces (glue around the kernels)
# ----------------------------------------------------------------------------
def decoder_layer(x, memory, p, pad, nhead):
    """nn.TransformerDecoderLayer (post-norm, relu, inference): 3 pallas_calls."""
    B, S, D = x.shape

    # ---- self-attention block: QKV proj + MHA + out-proj + residual + LN (fused)
    x = pallas_self_attn_layer(x, pad,
                               p["sa_qkv_w"], p["sa_qkv_b"],
                               p["sa_out_w"], p["sa_out_b"],
                               p["norm1_g"], p["norm1_b"], nhead=nhead)

    # ---- cross-attention block: Q/KV proj + MHA + out-proj + residual + LN (fused)
    x = pallas_cross_attn_layer(x, memory,
                                p["ca_q_w"], p["ca_q_b"],
                                p["ca_kv_w"], p["ca_kv_b"],
                                p["ca_out_w"], p["ca_out_b"],
                                p["norm2_g"], p["norm2_b"], nhead=nhead)

    # ---- feed-forward block fused with residual + LayerNorm
    x2 = pallas_ffn_add_ln(x.reshape(B * S, D),
                           p["lin1_w"], p["lin1_b"],
                           p["lin2_w"], p["lin2_b"],
                           p["norm3_g"], p["norm3_b"])
    return x2.reshape(B, S, D)


def positional_encoding(max_len, d_model):
    pos = jnp.arange(max_len, dtype=jnp.float32)[:, None]
    div = jnp.exp(jnp.arange(0, d_model, 2, dtype=jnp.float32)
                  * (-math.log(10000.0) / d_model))
    pe = jnp.zeros((max_len, d_model), jnp.float32)
    pe = pe.at[:, 0::2].set(jnp.sin(pos * div))
    pe = pe.at[:, 1::2].set(jnp.cos(pos * div))
    return pe[None]  # (1, max_len, d_model)


def init_params(key, vocab_size, d_model, nhead, num_layers, dim_ff,
                dtype=jnp.bfloat16):
    """Weights stored in the kernel-friendly layout:
       - matmul weights pre-transposed to (K, N), bf16
       - biases / LN params as (1, N), fp32
       (the 1/sqrt(Dh) softmax scale is applied in-kernel, so a PyTorch
        checkpoint converts directly into this layout)."""
    def nrm(k, shape, std=0.02):
        return std * jax.random.normal(k, shape, jnp.float32)

    emb_std = math.sqrt(2.0 / (vocab_size + d_model))   # xavier_normal_
    keys = jax.random.split(key, 3 + num_layers)
    params = {
        "embedding": emb_std * jax.random.normal(keys[0], (vocab_size, d_model),
                                                 jnp.float32),
        "fc_out_w": nrm(keys[1], (d_model, vocab_size)).astype(dtype),
        "fc_out_b": jnp.zeros((1, vocab_size), jnp.float32),
        "layers": [],
    }
    for li in range(num_layers):
        ks = jax.random.split(keys[3 + li], 7)
        params["layers"].append({
            "sa_qkv_w": nrm(ks[0], (d_model, 3 * d_model)).astype(dtype),
            "sa_qkv_b": jnp.zeros((1, 3 * d_model), jnp.float32),
            "sa_out_w": nrm(ks[1], (d_model, d_model)).astype(dtype),
            "sa_out_b": jnp.zeros((1, d_model), jnp.float32),
            "ca_q_w": nrm(ks[2], (d_model, d_model)).astype(dtype),
            "ca_q_b": jnp.zeros((1, d_model), jnp.float32),
            "ca_kv_w": nrm(ks[3], (d_model, 2 * d_model)).astype(dtype),
            "ca_kv_b": jnp.zeros((1, 2 * d_model), jnp.float32),
            "ca_out_w": nrm(ks[4], (d_model, d_model)).astype(dtype),
            "ca_out_b": jnp.zeros((1, d_model), jnp.float32),
            "lin1_w": nrm(ks[5], (d_model, dim_ff)).astype(dtype),
            "lin1_b": jnp.zeros((1, dim_ff), jnp.float32),
            "lin2_w": nrm(ks[6], (dim_ff, d_model)).astype(dtype),
            "lin2_b": jnp.zeros((1, d_model), jnp.float32),
            "norm1_g": jnp.ones((1, d_model), jnp.float32),
            "norm1_b": jnp.zeros((1, d_model), jnp.float32),
            "norm2_g": jnp.ones((1, d_model), jnp.float32),
            "norm2_b": jnp.zeros((1, d_model), jnp.float32),
            "norm3_g": jnp.ones((1, d_model), jnp.float32),
            "norm3_b": jnp.zeros((1, d_model), jnp.float32),
        })
    return params


def transformer_forward(params, src, pos_enc, d_model, nhead):
    """Mirrors TransformerModel.forward (inference: dropouts are identity).
    tgt_mask = causal (built in-kernel) + key-padding(src==0) for self-attention;
    memory_mask = causal only (no memory_key_padding_mask in the reference)."""
    B, S = src.shape

    # only the tiny (B,1,S) additive key-padding vector ever leaves HBM
    pad = jnp.where(src == 0, NEG_INF, 0.0).astype(jnp.float32).reshape(B, 1, S)

    # TODO(synk): embedding lookup (gather) stays in plain JAX; a blocked Pallas
    # equivalent would need a DMA-gather which is overkill here.
    x = jnp.take(params["embedding"], src, axis=0) * math.sqrt(d_model)
    x = (x + pos_enc[:, :S, :]).astype(jnp.bfloat16)
    memory = x

    for lp in params["layers"]:
        x = decoder_layer(x, memory, lp, pad, nhead)

    # self.dropout(output): identity at inference
    logits = pallas_linear(x.reshape(B * S, d_model),
                           params["fc_out_w"], params["fc_out_b"],
                           out_dtype=jnp.float32)
    return logits.reshape(B, S, -1)


# ----------------------------------------------------------------------------
if __name__ == "__main__":
    vocab_size = 50
    d_model = 32
    nhead = 4
    num_decoder_layers = 2
    dim_feedforward = 64
    max_seq_length = 16
    B, S = 2, 8

    key = jax.random.PRNGKey(0)
    kp, kx = jax.random.split(key)
    params = init_params(kp, vocab_size, d_model, nhead,
                         num_decoder_layers, dim_feedforward)
    pos_enc = positional_encoding(max_seq_length, d_model)

    # token ids; include one 0 (pad id) to exercise the padding mask
    src = jax.random.randint(kx, (B, S), minval=1, maxval=vocab_size,
                             dtype=jnp.int32)
    src = src.at[0, 3].set(0)

    fwd = jax.jit(functools.partial(transformer_forward,
                                    d_model=d_model, nhead=nhead))
    out = fwd(params, src, pos_enc)
    out = jax.block_until_ready(out)

    assert out.shape == (B, S, vocab_size), out.shape
    assert bool(jnp.all(jnp.isfinite(out)))
    print("KERNEL_OK")
</pallas_src>

<mosaic_0001>
module attributes {stable_mosaic.version = 11 : i64} {
  func.func @_self_attn_layer_kernel(%arg0: i32, %arg1: memref<1x8x32xbf16, #tpu.memory_space<vmem>>, %arg2: memref<1x1x8xf32, #tpu.memory_space<vmem>>, %arg3: memref<32x96xbf16, #tpu.memory_space<vmem>>, %arg4: memref<1x96xf32, #tpu.memory_space<vmem>>, %arg5: memref<32x32xbf16, #tpu.memory_space<vmem>>, %arg6: memref<1x32xf32, #tpu.memory_space<vmem>>, %arg7: memref<1x32xf32, #tpu.memory_space<vmem>>, %arg8: memref<1x32xf32, #tpu.memory_space<vmem>>, %arg9: memref<1x8x32xbf16, #tpu.memory_space<vmem>>, %arg10: memref<8x32xf32, #tpu.memory_space<vmem>>) attributes {dimension_semantics = [#tpu.dimension_semantics<parallel>], iteration_bounds = array<i64: 2>, scalar_prefetch = 0 : i64, scratch_operands = 1 : i64, tpu.core_type = #tpu.core_type<tc>, window_params = [{transform_indices = @transform_0, window_bounds = array<i64: 1, 8, 32>}, {transform_indices = @transform_1, window_bounds = array<i64: 1, 1, 8>}, {pipeline_mode = #tpu.pipeline_mode<synchronous>, transform_indices = @transform_2, window_bounds = array<i64: 32, 96>}, {pipeline_mode = #tpu.pipeline_mode<synchronous>, transform_indices = @transform_3, window_bounds = array<i64: 1, 96>}, {pipeline_mode = #tpu.pipeline_mode<synchronous>, transform_indices = @transform_4, window_bounds = array<i64: 32, 32>}, {pipeline_mode = #tpu.pipeline_mode<synchronous>, transform_indices = @transform_5, window_bounds = array<i64: 1, 32>}, {pipeline_mode = #tpu.pipeline_mode<synchronous>, transform_indices = @transform_6, window_bounds = array<i64: 1, 32>}, {pipeline_mode = #tpu.pipeline_mode<synchronous>, transform_indices = @transform_7, window_bounds = array<i64: 1, 32>}, {transform_indices = @transform_8, window_bounds = array<i64: 1, 8, 32>}]} {
    %c0 = arith.constant 0 : index
    %c0_0 = arith.constant 0 : index
    %c0_1 = arith.constant 0 : index
    %0 = vector.load %arg1[%c0, %c0_0, %c0_1] : memref<1x8x32xbf16, #tpu.memory_space<vmem>>, vector<1x8x32xbf16>
    %1 = vector.shape_cast %0 : vector<1x8x32xbf16> to vector<8x32xbf16>
    %c0_2 = arith.constant 0 : index
    %c0_3 = arith.constant 0 : index
    %2 = vector.load %arg3[%c0_2, %c0_3] : memref<32x96xbf16, #tpu.memory_space<vmem>>, vector<32x96xbf16>
    %cst = arith.constant dense<0.000000e+00> : vector<8x96xf32>
    %3 = tpu.matmul %1, %2, %cst {dimension_numbers = #tpu.dot_dimension_numbers<[1], [0], [0], [1], [0, 0, 1, 1], [], []>} : vector<8x32xbf16>, vector<32x96xbf16>, vector<8x96xf32> -> vector<8x96xf32>
    %c0_4 = arith.constant 0 : index
    %c0_5 = arith.constant 0 : index
    %4 = vector.load %arg4[%c0_4, %c0_5] : memref<1x96xf32, #tpu.memory_space<vmem>>, vector<1x96xf32>
    %5 = vector.broadcast %4 : vector<1x96xf32> to vector<8x96xf32>
    %6 = arith.addf %3, %5 : vector<8x96xf32>
    %7 = vector.extract_strided_slice %6 {offsets = [0, 0], sizes = [8, 32], strides = [1, 1]} : vector<8x96xf32> to vector<8x32xf32>
    %8 = vector.extract_strided_slice %6 {offsets = [0, 32], sizes = [8, 32], strides = [1, 1]} : vector<8x96xf32> to vector<8x32xf32>
    %9 = vector.extract_strided_slice %6 {offsets = [0, 64], sizes = [8, 32], strides = [1, 1]} : vector<8x96xf32> to vector<8x32xf32>
    %10 = tpu.iota {dimensions = array<i32: 0>} : vector<8x8xi32>
    %11 = tpu.iota {dimensions = array<i32: 1>} : vector<8x8xi32>
    %12 = arith.cmpi sgt, %11, %10 : vector<8x8xi32>
    %cst_6 = arith.constant -1.000000e+30 : f32
    %cst_7 = arith.constant 0.000000e+00 : f32
    %13 = vector.broadcast %cst_6 : f32 to vector<8x8xf32>
    %14 = vector.broadcast %cst_7 : f32 to vector<8x8xf32>
    %15 = arith.select %12, %13, %14 : vector<8x8xi1>, vector<8x8xf32>
    %c0_8 = arith.constant 0 : index
    %c0_9 = arith.constant 0 : index
    %c0_10 = arith.constant 0 : index
    %16 = vector.load %arg2[%c0_8, %c0_9, %c0_10] : memref<1x1x8xf32, #tpu.memory_space<vmem>>, vector<1x1x8xf32>
    %17 = vector.shape_cast %16 : vector<1x1x8xf32> to vector<1x8xf32>
    %18 = vector.broadcast %17 : vector<1x8xf32> to vector<8x8xf32>
    %19 = arith.addf %15, %18 : vector<8x8xf32>
    %20 = vector.extract_strided_slice %7 {offsets = [0, 0], sizes = [8, 8], strides = [1, 1]} : vector<8x32xf32> to vector<8x8xf32>
    %cst_11 = arith.constant 0.353553385 : f32
    %21 = vector.broadcast %cst_11 : f32 to vector<8x8xf32>
    %22 = arith.mulf %20, %21 : vector<8x8xf32>
    %23 = arith.truncf %22 : vector<8x8xf32> to vector<8x8xbf16>
    %24 = vector.extract_strided_slice %8 {offsets = [0, 0], sizes = [8, 8], strides = [1, 1]} : vector<8x32xf32> to vector<8x8xf32>
    %25 = arith.truncf %24 : vector<8x8xf32> to vector<8x8xbf16>
    %26 = vector.extract_strided_slice %9 {offsets = [0, 0], sizes = [8, 8], strides = [1, 1]} : vector<8x32xf32> to vector<8x8xf32>
    %27 = arith.truncf %26 : vector<8x8xf32> to vector<8x8xbf16>
    %cst_12 = arith.constant dense<0.000000e+00> : vector<8x8xf32>
    %28 = tpu.matmul %23, %25, %cst_12 {dimension_numbers = #tpu.dot_dimension_numbers<[1], [1], [0], [0], [0, 0, 1, 0], [], []>} : vector<8x8xbf16>, vector<8x8xbf16>, vector<8x8xf32> -> vector<8x8xf32>
    %29 = arith.addf %28, %19 : vector<8x8xf32>
    %cst_13 = arith.constant dense<0xFF800000> : vector<8xf32>
    %30 = vector.multi_reduction <maximumf>, %29, %cst_13 [1] : vector<8x8xf32> to vector<8xf32>
    %31 = vector.shape_cast %30 : vector<8xf32> to vector<8x1xf32>
    %32 = vector.broadcast %31 : vector<8x1xf32> to vector<8x8xf32>
    %33 = arith.subf %29, %32 : vector<8x8xf32>
    %34 = math.exp %33 : vector<8x8xf32>
    %cst_14 = arith.constant dense<0.000000e+00> : vector<8xf32>
    %35 = vector.multi_reduction <add>, %34, %cst_14 [1] : vector<8x8xf32> to vector<8xf32>
    %36 = vector.shape_cast %35 : vector<8xf32> to vector<8x1xf32>
    %37 = tpu.reciprocal %36 {approx = true} : vector<8x1xf32> -> vector<8x1xf32>
    %38 = vector.broadcast %37 : vector<8x1xf32> to vector<8x8xf32>
    %39 = arith.mulf %34, %38 : vector<8x8xf32>
    %40 = arith.truncf %39 : vector<8x8xf32> to vector<8x8xbf16>
    %cst_15 = arith.constant dense<0.000000e+00> : vector<8x8xf32>
    %41 = tpu.matmul %40, %27, %cst_15 {dimension_numbers = #tpu.dot_dimension_numbers<[1], [0], [0], [1], [0, 0, 1, 1], [], []>} : vector<8x8xbf16>, vector<8x8xbf16>, vector<8x8xf32> -> vector<8x8xf32>
    %c0_16 = arith.constant 0 : index
    %c0_17 = arith.constant 0 : index
    %42 = vector.load %arg10[%c0_16, %c0_17] : memref<8x32xf32, #tpu.memory_space<vmem>>, vector<8x8xf32>
    tpu.vector_store %arg10[%c0_16, %c0_17], %41 {strides = array<i32>} : memref<8x32xf32, #tpu.memory_space<vmem>>, vector<8x8xf32>,
    %43 = vector.extract_strided_slice %7 {offsets = [0, 8], sizes = [8, 8], strides = [1, 1]} : vector<8x32xf32> to vector<8x8xf32>
    %cst_18 = arith.constant 0.353553385 : f32
    %44 = vector.broadcast %cst_18 : f32 to vector<8x8xf32>
    %45 = arith.mulf %43, %44 : vector<8x8xf32>
    %46 = arith.truncf %45 : vector<8x8xf32> to vector<8x8xbf16>
    %47 = vector.extract_strided_slice %8 {offsets = [0, 8], sizes = [8, 8], strides = [1, 1]} : vector<8x32xf32> to vector<8x8xf32>
    %48 = arith.truncf %47 : vector<8x8xf32> to vector<8x8xbf16>
    %49 = vector.extract_strided_slice %9 {offsets = [0, 8], sizes = [8, 8], strides = [1, 1]} : vector<8x32xf32> to vector<8x8xf32>
    %50 = arith.truncf %49 : vector<8x8xf32> to vector<8x8xbf16>
    %cst_19 = arith.constant dense<0.000000e+00> : vector<8x8xf32>
    %51 = tpu.matmul %46, %48, %cst_19 {dimension_numbers = #tpu.dot_dimension_numbers<[1], [1], [0], [0], [0, 0, 1, 0], [], []>} : vector<8x8xbf16>, vector<8x8xbf16>, vector<8x8xf32> -> vector<8x8xf32>
    %52 = arith.addf %51, %19 : vector<8x8xf32>
    %cst_20 = arith.constant dense<0xFF800000> : vector<8xf32>
    %53 = vector.multi_reduction <maximumf>, %52, %cst_20 [1] : vector<8x8xf32> to vector<8xf32>
    %54 = vector.shape_cast %53 : vector<8xf32> to vector<8x1xf32>
    %55 = vector.broadcast %54 : vector<8x1xf32> to vector<8x8xf32>
    %56 = arith.subf %52, %55 : vector<8x8xf32>
    %57 = math.exp %56 : vector<8x8xf32>
    %cst_21 = arith.constant dense<0.000000e+00> : vector<8xf32>
    %58 = vector.multi_reduction <add>, %57, %cst_21 [1] : vector<8x8xf32> to vector<8xf32>
    %59 = vector.shape_cast %58 : vector<8xf32> to vector<8x1xf32>
    %60 = tpu.reciprocal %59 {approx = true} : vector<8x1xf32> -> vector<8x1xf32>
    %61 = vector.broadcast %60 : vector<8x1xf32> to vector<8x8xf32>
    %62 = arith.mulf %57, %61 : vector<8x8xf32>
    %63 = arith.truncf %62 : vector<8x8xf32> to vector<8x8xbf16>
    %cst_22 = arith.constant dense<0.000000e+00> : vector<8x8xf32>
    %64 = tpu.matmul %63, %50, %cst_22 {dimension_numbers = #tpu.dot_dimension_numbers<[1], [0], [0], [1], [0, 0, 1, 1], [], []>} : vector<8x8xbf16>, vector<8x8xbf16>, vector<8x8xf32> -> vector<8x8xf32>
    %c0_23 = arith.constant 0 : index
    %c8 = arith.constant 8 : index
    %65 = vector.load %arg10[%c0_23, %c8] : memref<8x32xf32, #tpu.memory_space<vmem>>, vector<8x8xf32>
    tpu.vector_store %arg10[%c0_23, %c8], %64 {strides = array<i32>} : memref<8x32xf32, #tpu.memory_space<vmem>>, vector<8x8xf32>,
    %66 = vector.extract_strided_slice %7 {offsets = [0, 16], sizes = [8, 8], strides = [1, 1]} : vector<8x32xf32> to vector<8x8xf32>
    %cst_24 = arith.constant 0.353553385 : f32
    %67 = vector.broadcast %cst_24 : f32 to vector<8x8xf32>
    %68 = arith.mulf %66, %67 : vector<8x8xf32>
    %69 = arith.truncf %68 : vector<8x8xf32> to vector<8x8xbf16>
    %70 = vector.extract_strided_slice %8 {offsets = [0, 16], sizes = [8, 8], strides = [1, 1]} : vector<8x32xf32> to vector<8x8xf32>
    %71 = arith.truncf %70 : vector<8x8xf32> to vector<8x8xbf16>
    %72 = vector.extract_strided_slice %9 {offsets = [0, 16], sizes = [8, 8], strides = [1, 1]} : vector<8x32xf32> to vector<8x8xf32>
    %73 = arith.truncf %72 : vector<8x8xf32> to vector<8x8xbf16>
    %cst_25 = arith.constant dense<0.000000e+00> : vector<8x8xf32>
    %74 = tpu.matmul %69, %71, %cst_25 {dimension_numbers = #tpu.dot_dimension_numbers<[1], [1], [0], [0], [0, 0, 1, 0], [], []>} : vector<8x8xbf16>, vector<8x8xbf16>, vector<8x8xf32> -> vector<8x8xf32>
    %75 = arith.addf %74, %19 : vector<8x8xf32>
    %cst_26 = arith.constant dense<0xFF800000> : vector<8xf32>
    %76 = vector.multi_reduction <maximumf>, %75, %cst_26 [1] : vector<8x8xf32> to vector<8xf32>
    %77 = vector.shape_cast %76 : vector<8xf32> to vector<8x1xf32>
    %78 = vector.broadcast %77 : vector<8x1xf32> to vector<8x8xf32>
    %79 = arith.subf %75, %78 : vector<8x8xf32>
    %80 = math.exp %79 : vector<8x8xf32>
    %cst_27 = arith.constant dense<0.000000e+00> : vector<8xf32>
    %81 = vector.multi_reduction <add>, %80, %cst_27 [1] : vector<8x8xf32> to vector<8xf32>
    %82 = vector.shape_cast %81 : vector<8xf32> to vector<8x1xf32>
    %83 = tpu.reciprocal %82 {approx = true} : vector<8x1xf32> -> vector<8x1xf32>
    %84 = vector.broadcast %83 : vector<8x1xf32> to vector<8x8xf32>
    %85 = arith.mulf %80, %84 : vector<8x8xf32>
    %86 = arith.truncf %85 : vector<8x8xf32> to vector<8x8xbf16>
    %cst_28 = arith.constant dense<0.000000e+00> : vector<8x8xf32>
    %87 = tpu.matmul %86, %73, %cst_28 {dimension_numbers = #tpu.dot_dimension_numbers<[1], [0], [0], [1], [0, 0, 1, 1], [], []>} : vector<8x8xbf16>, vector<8x8xbf16>, vector<8x8xf32> -> vector<8x8xf32>
    %c0_29 = arith.constant 0 : index
    %c16 = arith.constant 16 : index
    %88 = vector.load %arg10[%c0_29, %c16] : memref<8x32xf32, #tpu.memory_space<vmem>>, vector<8x8xf32>
    tpu.vector_store %arg10[%c0_29, %c16], %87 {strides = array<i32>} : memref<8x32xf32, #tpu.memory_space<vmem>>, vector<8x8xf32>,
    %89 = vector.extract_strided_slice %7 {offsets = [0, 24], sizes = [8, 8], strides = [1, 1]} : vector<8x32xf32> to vector<8x8xf32>
    %cst_30 = arith.constant 0.353553385 : f32
    %90 = vector.broadcast %cst_30 : f32 to vector<8x8xf32>
    %91 = arith.mulf %89, %90 : vector<8x8xf32>
    %92 = arith.truncf %91 : vector<8x8xf32> to vector<8x8xbf16>
    %93 = vector.extract_strided_slice %8 {offsets = [0, 24], sizes = [8, 8], strides = [1, 1]} : vector<8x32xf32> to vector<8x8xf32>
    %94 = arith.truncf %93 : vector<8x8xf32> to vector<8x8xbf16>
    %95 = vector.extract_strided_slice %9 {offsets = [0, 24], sizes = [8, 8], strides = [1, 1]} : vector<8x32xf32> to vector<8x8xf32>
    %96 = arith.truncf %95 : vector<8x8xf32> to vector<8x8xbf16>
    %cst_31 = arith.constant dense<0.000000e+00> : vector<8x8xf32>
    %97 = tpu.matmul %92, %94, %cst_31 {dimension_numbers = #tpu.dot_dimension_numbers<[1], [1], [0], [0], [0, 0, 1, 0], [], []>} : vector<8x8xbf16>, vector<8x8xbf16>, vector<8x8xf32> -> vector<8x8xf32>
    %98 = arith.addf %97, %19 : vector<8x8xf32>
    %cst_32 = arith.constant dense<0xFF800000> : vector<8xf32>
    %99 = vector.multi_reduction <maximumf>, %98, %cst_32 [1] : vector<8x8xf32> to vector<8xf32>
    %100 = vector.shape_cast %99 : vector<8xf32> to vector<8x1xf32>
    %101 = vector.broadcast %100 : vector<8x1xf32> to vector<8x8xf32>
    %102 = arith.subf %98, %101 : vector<8x8xf32>
    %103 = math.exp %102 : vector<8x8xf32>
    %cst_33 = arith.constant dense<0.000000e+00> : vector<8xf32>
    %104 = vector.multi_reduction <add>, %103, %cst_33 [1] : vector<8x8xf32> to vector<8xf32>
    %105 = vector.shape_cast %104 : vector<8xf32> to vector<8x1xf32>
    %106 = tpu.reciprocal %105 {approx = true} : vector<8x1xf32> -> vector<8x1xf32>
    %107 = vector.broadcast %106 : vector<8x1xf32> to vector<8x8xf32>
    %108 = arith.mulf %103, %107 : vector<8x8xf32>
    %109 = arith.truncf %108 : vector<8x8xf32> to vector<8x8xbf16>
    %cst_34 = arith.constant dense<0.000000e+00> : vector<8x8xf32>
    %110 = tpu.matmul %109, %96, %cst_34 {dimension_numbers = #tpu.dot_dimension_numbers<[1], [0], [0], [1], [0, 0, 1, 1], [], []>} : vector<8x8xbf16>, vector<8x8xbf16>, vector<8x8xf32> -> vector<8x8xf32>
    %c0_35 = arith.constant 0 : index
    %c24 = arith.constant 24 : index
    %111 = vector.load %arg10[%c0_35, %c24] : memref<8x32xf32, #tpu.memory_space<vmem>>, vector<8x8xf32>
    tpu.vector_store %arg10[%c0_35, %c24], %110 {strides = array<i32>} : memref<8x32xf32, #tpu.memory_space<vmem>>, vector<8x8xf32>,
    %c0_36 = arith.constant 0 : index
    %c0_37 = arith.constant 0 : index
    %112 = vector.load %arg10[%c0_36, %c0_37] : memref<8x32xf32, #tpu.memory_space<vmem>>, vector<8x32xf32>
    %113 = arith.truncf %112 : vector<8x32xf32> to vector<8x32xbf16>
    %c0_38 = arith.constant 0 : index
    %c0_39 = arith.constant 0 : index
    %114 = vector.load %arg5[%c0_38, %c0_39] : memref<32x32xbf16, #tpu.memory_space<vmem>>, vector<32x32xbf16>
    %cst_40 = arith.constant dense<0.000000e+00> : vector<8x32xf32>
    %115 = tpu.matmul %113, %114, %cst_40 {dimension_numbers = #tpu.dot_dimension_numbers<[1], [0], [0], [1], [0, 0, 1, 1], [], []>} : vector<8x32xbf16>, vector<32x32xbf16>, vector<8x32xf32> -> vector<8x32xf32>
    %c0_41 = arith.constant 0 : index
    %c0_42 = arith.constant 0 : index
    %116 = vector.load %arg6[%c0_41, %c0_42] : memref<1x32xf32, #tpu.memory_space<vmem>>, vector<1x32xf32>
    %117 = vector.broadcast %116 : vector<1x32xf32> to vector<8x32xf32>
    %118 = arith.addf %115, %117 : vector<8x32xf32>
    %119 = arith.extf %1 : vector<8x32xbf16> to vector<8x32xf32>
    %120 = arith.addf %119, %118 : vector<8x32xf32>
    %c0_43 = arith.constant 0 : index
    %c0_44 = arith.constant 0 : index
    %121 = vector.load %arg7[%c0_43, %c0_44] : memref<1x32xf32, #tpu.memory_space<vmem>>, vector<1x32xf32>
    %c0_45 = arith.constant 0 : index
    %c0_46 = arith.constant 0 : index
    %122 = vector.load %arg8[%c0_45, %c0_46] : memref<1x32xf32, #tpu.memory_space<vmem>>, vector<1x32xf32>
    %cst_47 = arith.constant dense<0.000000e+00> : vector<8xf32>
    %123 = vector.multi_reduction <add>, %120, %cst_47 [1] : vector<8x32xf32> to vector<8xf32>
    %124 = vector.shape_cast %123 : vector<8xf32> to vector<8x1xf32>
    %cst_48 = arith.constant 3.200000e+01 : f32
    %125 = vector.broadcast %cst_48 : f32 to vector<8x1xf32>
    %126 = arith.divf %124, %125 : vector<8x1xf32>
    %127 = vector.broadcast %126 : vector<8x1xf32> to vector<8x32xf32>
    %128 = arith.subf %120, %127 : vector<8x32xf32>
    %129 = vector.broadcast %126 : vector<8x1xf32> to vector<8x32xf32>
    %130 = arith.subf %120, %129 : vector<8x32xf32>
    %131 = arith.mulf %128, %130 : vector<8x32xf32>
    %cst_49 = arith.constant dense<0.000000e+00> : vector<8xf32>
    %132 = vector.multi_reduction <add>, %131, %cst_49 [1] : vector<8x32xf32> to vector<8xf32>
    %133 = vector.shape_cast %132 : vector<8xf32> to vector<8x1xf32>
    %cst_50 = arith.constant 3.200000e+01 : f32
    %134 = vector.broadcast %cst_50 : f32 to vector<8x1xf32>
    %135 = arith.divf %133, %134 : vector<8x1xf32>
    %136 = vector.broadcast %126 : vector<8x1xf32> to vector<8x32xf32>
    %137 = arith.subf %120, %136 : vector<8x32xf32>
    %cst_51 = arith.constant 9.99999974E-6 : f32
    %138 = vector.broadcast %cst_51 : f32 to vector<8x1xf32>
    %139 = arith.addf %135, %138 : vector<8x1xf32>
    %140 = math.rsqrt %139 : vector<8x1xf32>
    %141 = vector.broadcast %140 : vector<8x1xf32> to vector<8x32xf32>
    %142 = arith.mulf %137, %141 : vector<8x32xf32>
    %143 = vector.broadcast %121 : vector<1x32xf32> to vector<8x32xf32>
    %144 = arith.mulf %142, %143 : vector<8x32xf32>
    %145 = vector.broadcast %122 : vector<1x32xf32> to vector<8x32xf32>
    %146 = arith.addf %144, %145 : vector<8x32xf32>
    %147 = arith.truncf %146 : vector<8x32xf32> to vector<8x32xbf16>
    %c0_52 = arith.constant 0 : index
    %c0_53 = arith.constant 0 : index
    %c0_54 = arith.constant 0 : index
    %148 = vector.load %arg9[%c0_52, %c0_53, %c0_54] : memref<1x8x32xbf16, #tpu.memory_space<vmem>>, vector<1x8x32xbf16>
    %149 = vector.shape_cast %148 : vector<1x8x32xbf16> to vector<8x32xbf16>
    %150 = vector.shape_cast %147 : vector<8x32xbf16> to vector<1x8x32xbf16>
    tpu.vector_store %arg9[%c0_52, %c0_53, %c0_54], %150 {strides = array<i32>} : memref<1x8x32xbf16, #tpu.memory_space<vmem>>, vector<1x8x32xbf16>,
    return
  }
  func.func @transform_0(%arg0: i32) -> (i32, i32, i32) {
    %c0_i32 = arith.constant 0 : i32
    %c0_i32_0 = arith.constant 0 : i32
    %c0_i32_1 = arith.constant 0 : i32
    return %arg0, %c0_i32, %c0_i32_0 : i32, i32, i32
  }
  func.func @transform_1(%arg0: i32) -> (i32, i32, i32) {
    %c0_i32 = arith.constant 0 : i32
    %c0_i32_0 = arith.constant 0 : i32
    %c0_i32_1 = arith.constant 0 : i32
    return %arg0, %c0_i32, %c0_i32_0 : i32, i32, i32
  }
  func.func @transform_2(%arg0: i32) -> (i32, i32) {
    %c0_i32 = arith.constant 0 : i32
    %c0_i32_0 = arith.constant 0 : i32
    %c0_i32_1 = arith.constant 0 : i32
    return %c0_i32, %c0_i32_0 : i32, i32
  }
  func.func @transform_3(%arg0: i32) -> (i32, i32) {
    %c0_i32 = arith.constant 0 : i32
    %c0_i32_0 = arith.constant 0 : i32
    %c0_i32_1 = arith.constant 0 : i32
    return %c0_i32, %c0_i32_0 : i32, i32
  }
  func.func @transform_4(%arg0: i32) -> (i32, i32) {
    %c0_i32 = arith.constant 0 : i32
    %c0_i32_0 = arith.constant 0 : i32
    %c0_i32_1 = arith.constant 0 : i32
    return %c0_i32, %c0_i32_0 : i32, i32
  }
  func.func @transform_5(%arg0: i32) -> (i32, i32) {
    %c0_i32 = arith.constant 0 : i32
    %c0_i32_0 = arith.constant 0 : i32
    %c0_i32_1 = arith.constant 0 : i32
    return %c0_i32, %c0_i32_0 : i32, i32
  }
  func.func @transform_6(%arg0: i32) -> (i32, i32) {
    %c0_i32 = arith.constant 0 : i32
    %c0_i32_0 = arith.constant 0 : i32
    %c0_i32_1 = arith.constant 0 : i32
    return %c0_i32, %c0_i32_0 : i32, i32
  }
  func.func @transform_7(%arg0: i32) -> (i32, i32) {
    %c0_i32 = arith.constant 0 : i32
    %c0_i32_0 = arith.constant 0 : i32
    %c0_i32_1 = arith.constant 0 : i32
    return %c0_i32, %c0_i32_0 : i32, i32
  }
  func.func @transform_8(%arg0: i32) -> (i32, i32, i32) {
    %c0_i32 = arith.constant 0 : i32
    %c0_i32_0 = arith.constant 0 : i32
    %c0_i32_1 = arith.constant 0 : i32
    return %arg0, %c0_i32, %c0_i32_0 : i32, i32, i32
  }
}

module attributes {stable_mosaic.version = 11 : i64} {
  func.func @_cross_attn_layer_kernel(%arg0: i32, %arg1: memref<1x8x32xbf16, #tpu.memory_space<vmem>>, %arg2: memref<1x8x32xbf16, #tpu.memory_space<vmem>>, %arg3: memref<32x32xbf16, #tpu.memory_space<vmem>>, %arg4: memref<1x32xf32, #tpu.memory_space<vmem>>, %arg5: memref<32x64xbf16, #tpu.memory_space<vmem>>, %arg6: memref<1x64xf32, #tpu.memory_space<vmem>>, %arg7: memref<32x32xbf16, #tpu.memory_space<vmem>>, %arg8: memref<1x32xf32, #tpu.memory_space<vmem>>, %arg9: memref<1x32xf32, #tpu.memory_space<vmem>>, %arg10: memref<1x32xf32, #tpu.memory_space<vmem>>, %arg11: memref<1x8x32xbf16, #tpu.memory_space<vmem>>, %arg12: memref<8x32xf32, #tpu.memory_space<vmem>>) attributes {dimension_semantics = [#tpu.dimension_semantics<parallel>], iteration_bounds = array<i64: 2>, scalar_prefetch = 0 : i64, scratch_operands = 1 : i64, tpu.core_type = #tpu.core_type<tc>, window_params = [{transform_indices = @transform_0, window_bounds = array<i64: 1, 8, 32>}, {transform_indices = @transform_1, window_bounds = array<i64: 1, 8, 32>}, {pipeline_mode = #tpu.pipeline_mode<synchronous>, transform_indices = @transform_2, window_bounds = array<i64: 32, 32>}, {pipeline_mode = #tpu.pipeline_mode<synchronous>, transform_indices = @transform_3, window_bounds = array<i64: 1, 32>}, {pipeline_mode = #tpu.pipeline_mode<synchronous>, transform_indices = @transform_4, window_bounds = array<i64: 32, 64>}, {pipeline_mode = #tpu.pipeline_mode<synchronous>, transform_indices = @transform_5, window_bounds = array<i64: 1, 64>}, {pipeline_mode = #tpu.pipeline_mode<synchronous>, transform_indices = @transform_6, window_bounds = array<i64: 32, 32>}, {pipeline_mode = #tpu.pipeline_mode<synchronous>, transform_indices = @transform_7, window_bounds = array<i64: 1, 32>}, {pipeline_mode = #tpu.pipeline_mode<synchronous>, transform_indices = @transform_8, window_bounds = array<i64: 1, 32>}, {pipeline_mode = #tpu.pipeline_mode<synchronous>, transform_indices = @transform_9, window_bounds = array<i64: 1, 32>}, {transform_indices = @transform_10, window_bounds = array<i64: 1, 8, 32>}]} {
    %c0 = arith.constant 0 : index
    %c0_0 = arith.constant 0 : index
    %c0_1 = arith.constant 0 : index
    %0 = vector.load %arg1[%c0, %c0_0, %c0_1] : memref<1x8x32xbf16, #tpu.memory_space<vmem>>, vector<1x8x32xbf16>
    %1 = vector.shape_cast %0 : vector<1x8x32xbf16> to vector<8x32xbf16>
    %c0_2 = arith.constant 0 : index
    %c0_3 = arith.constant 0 : index
    %c0_4 = arith.constant 0 : index
    %2 = vector.load %arg2[%c0_2, %c0_3, %c0_4] : memref<1x8x32xbf16, #tpu.memory_space<vmem>>, vector<1x8x32xbf16>
    %3 = vector.shape_cast %2 : vector<1x8x32xbf16> to vector<8x32xbf16>
    %c0_5 = arith.constant 0 : index
    %c0_6 = arith.constant 0 : index
    %4 = vector.load %arg3[%c0_5, %c0_6] : memref<32x32xbf16, #tpu.memory_space<vmem>>, vector<32x32xbf16>
    %cst = arith.constant dense<0.000000e+00> : vector<8x32xf32>
    %5 = tpu.matmul %1, %4, %cst {dimension_numbers = #tpu.dot_dimension_numbers<[1], [0], [0], [1], [0, 0, 1, 1], [], []>} : vector<8x32xbf16>, vector<32x32xbf16>, vector<8x32xf32> -> vector<8x32xf32>
    %c0_7 = arith.constant 0 : index
    %c0_8 = arith.constant 0 : index
    %6 = vector.load %arg4[%c0_7, %c0_8] : memref<1x32xf32, #tpu.memory_space<vmem>>, vector<1x32xf32>
    %7 = vector.broadcast %6 : vector<1x32xf32> to vector<8x32xf32>
    %8 = arith.addf %5, %7 : vector<8x32xf32>
    %c0_9 = arith.constant 0 : index
    %c0_10 = arith.constant 0 : index
    %9 = vector.load %arg5[%c0_9, %c0_10] : memref<32x64xbf16, #tpu.memory_space<vmem>>, vector<32x64xbf16>
    %cst_11 = arith.constant dense<0.000000e+00> : vector<8x64xf32>
    %10 = tpu.matmul %3, %9, %cst_11 {dimension_numbers = #tpu.dot_dimension_numbers<[1], [0], [0], [1], [0, 0, 1, 1], [], []>} : vector<8x32xbf16>, vector<32x64xbf16>, vector<8x64xf32> -> vector<8x64xf32>
    %c0_12 = arith.constant 0 : index
    %c0_13 = arith.constant 0 : index
    %11 = vector.load %arg6[%c0_12, %c0_13] : memref<1x64xf32, #tpu.memory_space<vmem>>, vector<1x64xf32>
    %12 = vector.broadcast %11 : vector<1x64xf32> to vector<8x64xf32>
    %13 = arith.addf %10, %12 : vector<8x64xf32>
    %14 = vector.extract_strided_slice %13 {offsets = [0, 0], sizes = [8, 32], strides = [1, 1]} : vector<8x64xf32> to vector<8x32xf32>
    %15 = vector.extract_strided_slice %13 {offsets = [0, 32], sizes = [8, 32], strides = [1, 1]} : vector<8x64xf32> to vector<8x32xf32>
    %16 = tpu.iota {dimensions = array<i32: 0>} : vector<8x8xi32>
    %17 = tpu.iota {dimensions = array<i32: 1>} : vector<8x8xi32>
    %18 = arith.cmpi sgt, %17, %16 : vector<8x8xi32>
    %cst_14 = arith.constant -1.000000e+30 : f32
    %cst_15 = arith.constant 0.000000e+00 : f32
    %19 = vector.broadcast %cst_14 : f32 to vector<8x8xf32>
    %20 = vector.broadcast %cst_15 : f32 to vector<8x8xf32>
    %21 = arith.select %18, %19, %20 : vector<8x8xi1>, vector<8x8xf32>
    %22 = vector.extract_strided_slice %8 {offsets = [0, 0], sizes = [8, 8], strides = [1, 1]} : vector<8x32xf32> to vector<8x8xf32>
    %cst_16 = arith.constant 0.353553385 : f32
    %23 = vector.broadcast %cst_16 : f32 to vector<8x8xf32>
    %24 = arith.mulf %22, %23 : vector<8x8xf32>
    %25 = arith.truncf %24 : vector<8x8xf32> to vector<8x8xbf16>
    %26 = vector.extract_strided_slice %14 {offsets = [0, 0], sizes = [8, 8], strides = [1, 1]} : vector<8x32xf32> to vector<8x8xf32>
    %27 = arith.truncf %26 : vector<8x8xf32> to vector<8x8xbf16>
    %28 = vector.extract_strided_slice %15 {offsets = [0, 0], sizes = [8, 8], strides = [1, 1]} : vector<8x32xf32> to vector<8x8xf32>
    %29 = arith.truncf %28 : vector<8x8xf32> to vector<8x8xbf16>
    %cst_17 = arith.constant dense<0.000000e+00> : vector<8x8xf32>
    %30 = tpu.matmul %25, %27, %cst_17 {dimension_numbers = #tpu.dot_dimension_numbers<[1], [1], [0], [0], [0, 0, 1, 0], [], []>} : vector<8x8xbf16>, vector<8x8xbf16>, vector<8x8xf32> -> vector<8x8xf32>
    %31 = arith.addf %30, %21 : vector<8x8xf32>
    %cst_18 = arith.constant dense<0xFF800000> : vector<8xf32>
    %32 = vector.multi_reduction <maximumf>, %31, %cst_18 [1] : vector<8x8xf32> to vector<8xf32>
    %33 = vector.shape_cast %32 : vector<8xf32> to vector<8x1xf32>
    %34 = vector.broadcast %33 : vector<8x1xf32> to vector<8x8xf32>
    %35 = arith.subf %31, %34 : vector<8x8xf32>
    %36 = math.exp %35 : vector<8x8xf32>
    %cst_19 = arith.constant dense<0.000000e+00> : vector<8xf32>
    %37 = vector.multi_reduction <add>, %36, %cst_19 [1] : vector<8x8xf32> to vector<8xf32>
    %38 = vector.shape_cast %37 : vector<8xf32> to vector<8x1xf32>
    %39 = tpu.reciprocal %38 {approx = true} : vector<8x1xf32> -> vector<8x1xf32>
    %40 = vector.broadcast %39 : vector<8x1xf32> to vector<8x8xf32>
    %41 = arith.mulf %36, %40 : vector<8x8xf32>
    %42 = arith.truncf %41 : vector<8x8xf32> to vector<8x8xbf16>
    %cst_20 = arith.constant dense<0.000000e+00> : vector<8x8xf32>
    %43 = tpu.matmul %42, %29, %cst_20 {dimension_numbers = #tpu.dot_dimension_numbers<[1], [0], [0], [1], [0, 0, 1, 1], [], []>} : vector<8x8xbf16>, vector<8x8xbf16>, vector<8x8xf32> -> vector<8x8xf32>
    %c0_21 = arith.constant 0 : index
    %c0_22 = arith.constant 0 : index
    %44 = vector.load %arg12[%c0_21, %c0_22] : memref<8x32xf32, #tpu.memory_space<vmem>>, vector<8x8xf32>
    tpu.vector_store %arg12[%c0_21, %c0_22], %43 {strides = array<i32>} : memref<8x32xf32, #tpu.memory_space<vmem>>, vector<8x8xf32>,
    %45 = vector.extract_strided_slice %8 {offsets = [0, 8], sizes = [8, 8], strides = [1, 1]} : vector<8x32xf32> to vector<8x8xf32>
    %cst_23 = arith.constant 0.353553385 : f32
    %46 = vector.broadcast %cst_23 : f32 to vector<8x8xf32>
    %47 = arith.mulf %45, %46 : vector<8x8xf32>
    %48 = arith.truncf %47 : vector<8x8xf32> to vector<8x8xbf16>
    %49 = vector.extract_strided_slice %14 {offsets = [0, 8], sizes = [8, 8], strides = [1, 1]} : vector<8x32xf32> to vector<8x8xf32>
    %50 = arith.truncf %49 : vector<8x8xf32> to vector<8x8xbf16>
    %51 = vector.extract_strided_slice %15 {offsets = [0, 8], sizes = [8, 8], strides = [1, 1]} : vector<8x32xf32> to vector<8x8xf32>
    %52 = arith.truncf %51 : vector<8x8xf32> to vector<8x8xbf16>
    %cst_24 = arith.constant dense<0.000000e+00> : vector<8x8xf32>
    %53 = tpu.matmul %48, %50, %cst_24 {dimension_numbers = #tpu.dot_dimension_numbers<[1], [1], [0], [0], [0, 0, 1, 0], [], []>} : vector<8x8xbf16>, vector<8x8xbf16>, vector<8x8xf32> -> vector<8x8xf32>
    %54 = arith.addf %53, %21 : vector<8x8xf32>
    %cst_25 = arith.constant dense<0xFF800000> : vector<8xf32>
    %55 = vector.multi_reduction <maximumf>, %54, %cst_25 [1] : vector<8x8xf32> to vector<8xf32>
    %56 = vector.shape_cast %55 : vector<8xf32> to vector<8x1xf32>
    %57 = vector.broadcast %56 : vector<8x1xf32> to vector<8x8xf32>
    %58 = arith.subf %54, %57 : vector<8x8xf32>
    %59 = math.exp %58 : vector<8x8xf32>
    %cst_26 = arith.constant dense<0.000000e+00> : vector<8xf32>
    %60 = vector.multi_reduction <add>, %59, %cst_26 [1] : vector<8x8xf32> to vector<8xf32>
    %61 = vector.shape_cast %60 : vector<8xf32> to vector<8x1xf32>
    %62 = tpu.reciprocal %61 {approx = true} : vector<8x1xf32> -> vector<8x1xf32>
    %63 = vector.broadcast %62 : vector<8x1xf32> to vector<8x8xf32>
    %64 = arith.mulf %59, %63 : vector<8x8xf32>
    %65 = arith.truncf %64 : vector<8x8xf32> to vector<8x8xbf16>
    %cst_27 = arith.constant dense<0.000000e+00> : vector<8x8xf32>
    %66 = tpu.matmul %65, %52, %cst_27 {dimension_numbers = #tpu.dot_dimension_numbers<[1], [0], [0], [1], [0, 0, 1, 1], [], []>} : vector<8x8xbf16>, vector<8x8xbf16>, vector<8x8xf32> -> vector<8x8xf32>
    %c0_28 = arith.constant 0 : index
    %c8 = arith.constant 8 : index
    %67 = vector.load %arg12[%c0_28, %c8] : memref<8x32xf32, #tpu.memory_space<vmem>>, vector<8x8xf32>
    tpu.vector_store %arg12[%c0_28, %c8], %66 {strides = array<i32>} : memref<8x32xf32, #tpu.memory_space<vmem>>, vector<8x8xf32>,
    %68 = vector.extract_strided_slice %8 {offsets = [0, 16], sizes = [8, 8], strides = [1, 1]} : vector<8x32xf32> to vector<8x8xf32>
    %cst_29 = arith.constant 0.353553385 : f32
    %69 = vector.broadcast %cst_29 : f32 to vector<8x8xf32>
    %70 = arith.mulf %68, %69 : vector<8x8xf32>
    %71 = arith.truncf %70 : vector<8x8xf32> to vector<8x8xbf16>
    %72 = vector.extract_strided_slice %14 {offsets = [0, 16], sizes = [8, 8], strides = [1, 1]} : vector<8x32xf32> to vector<8x8xf32>
    %73 = arith.truncf %72 : vector<8x8xf32> to vector<8x8xbf16>
    %74 = vector.extract_strided_slice %15 {offsets = [0, 16], sizes = [8, 8], strides = [1, 1]} : vector<8x32xf32> to vector<8x8xf32>
    %75 = arith.truncf %74 : vector<8x8xf32> to vector<8x8xbf16>
    %cst_30 = arith.constant dense<0.000000e+00> : vector<8x8xf32>
    %76 = tpu.matmul %71, %73, %cst_30 {dimension_numbers = #tpu.dot_dimension_numbers<[1], [1], [0], [0], [0, 0, 1, 0], [], []>} : vector<8x8xbf16>, vector<8x8xbf16>, vector<8x8xf32> -> vector<8x8xf32>
    %77 = arith.addf %76, %21 : vector<8x8xf32>
    %cst_31 = arith.constant dense<0xFF800000> : vector<8xf32>
    %78 = vector.multi_reduction <maximumf>, %77, %cst_31 [1] : vector<8x8xf32> to vector<8xf32>
    %79 = vector.shape_cast %78 : vector<8xf32> to vector<8x1xf32>
    %80 = vector.broadcast %79 : vector<8x1xf32> to vector<8x8xf32>
    %81 = arith.subf %77, %80 : vector<8x8xf32>
    %82 = math.exp %81 : vector<8x8xf32>
    %cst_32 = arith.constant dense<0.000000e+00> : vector<8xf32>
    %83 = vector.multi_reduction <add>, %82, %cst_32 [1] : vector<8x8xf32> to vector<8xf32>
    %84 = vector.shape_cast %83 : vector<8xf32> to vector<8x1xf32>
    %85 = tpu.reciprocal %84 {approx = true} : vector<8x1xf32> -> vector<8x1xf32>
    %86 = vector.broadcast %85 : vector<8x1xf32> to vector<8x8xf32>
    %87 = arith.mulf %82, %86 : vector<8x8xf32>
    %88 = arith.truncf %87 : vector<8x8xf32> to vector<8x8xbf16>
    %cst_33 = arith.constant dense<0.000000e+00> : vector<8x8xf32>
    %89 = tpu.matmul %88, %75, %cst_33 {dimension_numbers = #tpu.dot_dimension_numbers<[1], [0], [0], [1], [0, 0, 1, 1], [], []>} : vector<8x8xbf16>, vector<8x8xbf16>, vector<8x8xf32> -> vector<8x8xf32>
    %c0_34 = arith.constant 0 : index
    %c16 = arith.constant 16 : index
    %90 = vector.load %arg12[%c0_34, %c16] : memref<8x32xf32, #tpu.memory_space<vmem>>, vector<8x8xf32>
    tpu.vector_store %arg12[%c0_34, %c16], %89 {strides = array<i32>} : memref<8x32xf32, #tpu.memory_space<vmem>>, vector<8x8xf32>,
    %91 = vector.extract_strided_slice %8 {offsets = [0, 24], sizes = [8, 8], strides = [1, 1]} : vector<8x32xf32> to vector<8x8xf32>
    %cst_35 = arith.constant 0.353553385 : f32
    %92 = vector.broadcast %cst_35 : f32 to vector<8x8xf32>
    %93 = arith.mulf %91, %92 : vector<8x8xf32>
    %94 = arith.truncf %93 : vector<8x8xf32> to vector<8x8xbf16>
    %95 = vector.extract_strided_slice %14 {offsets = [0, 24], sizes = [8, 8], strides = [1, 1]} : vector<8x32xf32> to vector<8x8xf32>
    %96 = arith.truncf %95 : vector<8x8xf32> to vector<8x8xbf16>
    %97 = vector.extract_strided_slice %15 {offsets = [0, 24], sizes = [8, 8], strides = [1, 1]} : vector<8x32xf32> to vector<8x8xf32>
    %98 = arith.truncf %97 : vector<8x8xf32> to vector<8x8xbf16>
    %cst_36 = arith.constant dense<0.000000e+00> : vector<8x8xf32>
    %99 = tpu.matmul %94, %96, %cst_36 {dimension_numbers = #tpu.dot_dimension_numbers<[1], [1], [0], [0], [0, 0, 1, 0], [], []>} : vector<8x8xbf16>, vector<8x8xbf16>, vector<8x8xf32> -> vector<8x8xf32>
    %100 = arith.addf %99, %21 : vector<8x8xf32>
    %cst_37 = arith.constant dense<0xFF800000> : vector<8xf32>
    %101 = vector.multi_reduction <maximumf>, %100, %cst_37 [1] : vector<8x8xf32> to vector<8xf32>
    %102 = vector.shape_cast %101 : vector<8xf32> to vector<8x1xf32>
    %103 = vector.broadcast %102 : vector<8x1xf32> to vector<8x8xf32>
    %104 = arith.subf %100, %103 : vector<8x8xf32>
    %105 = math.exp %104 : vector<8x8xf32>
    %cst_38 = arith.constant dense<0.000000e+00> : vector<8xf32>
    %106 = vector.multi_reduction <add>, %105, %cst_38 [1] : vector<8x8xf32> to vector<8xf32>
    %107 = vector.shape_cast %106 : vector<8xf32> to vector<8x1xf32>
    %108 = tpu.reciprocal %107 {approx = true} : vector<8x1xf32> -> vector<8x1xf32>
    %109 = vector.broadcast %108 : vector<8x1xf32> to vector<8x8xf32>
    %110 = arith.mulf %105, %109 : vector<8x8xf32>
    %111 = arith.truncf %110 : vector<8x8xf32> to vector<8x8xbf16>
    %cst_39 = arith.constant dense<0.000000e+00> : vector<8x8xf32>
    %112 = tpu.matmul %111, %98, %cst_39 {dimension_numbers = #tpu.dot_dimension_numbers<[1], [0], [0], [1], [0, 0, 1, 1], [], []>} : vector<8x8xbf16>, vector<8x8xbf16>, vector<8x8xf32> -> vector<8x8xf32>
    %c0_40 = arith.constant 0 : index
    %c24 = arith.constant 24 : index
    %113 = vector.load %arg12[%c0_40, %c24] : memref<8x32xf32, #tpu.memory_space<vmem>>, vector<8x8xf32>
    tpu.vector_store %arg12[%c0_40, %c24], %112 {strides = array<i32>} : memref<8x32xf32, #tpu.memory_space<vmem>>, vector<8x8xf32>,
    %c0_41 = arith.constant 0 : index
    %c0_42 = arith.constant 0 : index
    %114 = vector.load %arg12[%c0_41, %c0_42] : memref<8x32xf32, #tpu.memory_space<vmem>>, vector<8x32xf32>
    %115 = arith.truncf %114 : vector<8x32xf32> to vector<8x32xbf16>
    %c0_43 = arith.constant 0 : index
    %c0_44 = arith.constant 0 : index
    %116 = vector.load %arg7[%c0_43, %c0_44] : memref<32x32xbf16, #tpu.memory_space<vmem>>, vector<32x32xbf16>
    %cst_45 = arith.constant dense<0.000000e+00> : vector<8x32xf32>
    %117 = tpu.matmul %115, %116, %cst_45 {dimension_numbers = #tpu.dot_dimension_numbers<[1], [0], [0], [1], [0, 0, 1, 1], [], []>} : vector<8x32xbf16>, vector<32x32xbf16>, vector<8x32xf32> -> vector<8x32xf32>
    %c0_46 = arith.constant 0 : index
    %c0_47 = arith.constant 0 : index
    %118 = vector.load %arg8[%c0_46, %c0_47] : memref<1x32xf32, #tpu.memory_space<vmem>>, vector<1x32xf32>
    %119 = vector.broadcast %118 : vector<1x32xf32> to vector<8x32xf32>
    %120 = arith.addf %117, %119 : vector<8x32xf32>
    %121 = arith.extf %1 : vector<8x32xbf16> to vector<8x32xf32>
    %122 = arith.addf %121, %120 : vector<8x32xf32>
    %c0_48 = arith.constant 0 : index
    %c0_49 = arith.constant 0 : index
    %123 = vector.load %arg9[%c0_48, %c0_49] : memref<1x32xf32, #tpu.memory_space<vmem>>, vector<1x32xf32>
    %c0_50 = arith.constant 0 : index
    %c0_51 = arith.constant 0 : index
    %124 = vector.load %arg10[%c0_50, %c0_51] : memref<1x32xf32, #tpu.memory_space<vmem>>, vector<1x32xf32>
    %cst_52 = arith.constant dense<0.000000e+00> : vector<8xf32>
    %125 = vector.multi_reduction <add>, %122, %cst_52 [1] : vector<8x32xf32> to vector<8xf32>
    %126 = vector.shape_cast %125 : vector<8xf32> to vector<8x1xf32>
    %cst_53 = arith.constant 3.200000e+01 : f32
    %127 = vector.broadcast %cst_53 : f32 to vector<8x1xf32>
    %128 = arith.divf %126, %127 : vector<8x1xf32>
    %129 = vector.broadcast %128 : vector<8x1xf32> to vector<8x32xf32>
    %130 = arith.subf %122, %129 : vector<8x32xf32>
    %131 = vector.broadcast %128 : vector<8x1xf32> to vector<8x32xf32>
    %132 = arith.subf %122, %131 : vector<8x32xf32>
    %133 = arith.mulf %130, %132 : vector<8x32xf32>
    %cst_54 = arith.constant dense<0.000000e+00> : vector<8xf32>
    %134 = vector.multi_reduction <add>, %133, %cst_54 [1] : vector<8x32xf32> to vector<8xf32>
    %135 = vector.shape_cast %134 : vector<8xf32> to vector<8x1xf32>
    %cst_55 = arith.constant 3.200000e+01 : f32
    %136 = vector.broadcast %cst_55 : f32 to vector<8x1xf32>
    %137 = arith.divf %135, %136 : vector<8x1xf32>
    %138 = vector.broadcast %128 : vector<8x1xf32> to vector<8x32xf32>
    %139 = arith.subf %122, %138 : vector<8x32xf32>
    %cst_56 = arith.constant 9.99999974E-6 : f32
    %140 = vector.broadcast %cst_56 : f32 to vector<8x1xf32>
    %141 = arith.addf %137, %140 : vector<8x1xf32>
    %142 = math.rsqrt %141 : vector<8x1xf32>
    %143 = vector.broadcast %142 : vector<8x1xf32> to vector<8x32xf32>
    %144 = arith.mulf %139, %143 : vector<8x32xf32>
    %145 = vector.broadcast %123 : vector<1x32xf32> to vector<8x32xf32>
    %146 = arith.mulf %144, %145 : vector<8x32xf32>
    %147 = vector.broadcast %124 : vector<1x32xf32> to vector<8x32xf32>
    %148 = arith.addf %146, %147 : vector<8x32xf32>
    %149 = arith.truncf %148 : vector<8x32xf32> to vector<8x32xbf16>
    %c0_57 = arith.constant 0 : index
    %c0_58 = arith.constant 0 : index
    %c0_59 = arith.constant 0 : index
    %150 = vector.load %arg11[%c0_57, %c0_58, %c0_59] : memref<1x8x32xbf16, #tpu.memory_space<vmem>>, vector<1x8x32xbf16>
    %151 = vector.shape_cast %150 : vector<1x8x32xbf16> to vector<8x32xbf16>
    %152 = vector.shape_cast %149 : vector<8x32xbf16> to vector<1x8x32xbf16>
    tpu.vector_store %arg11[%c0_57, %c0_58, %c0_59], %152 {strides = array<i32>} : memref<1x8x32xbf16, #tpu.memory_space<vmem>>, vector<1x8x32xbf16>,
    return
  }
  func.func @transform_0(%arg0: i32) -> (i32, i32, i32) {
    %c0_i32 = arith.constant 0 : i32
    %c0_i32_0 = arith.constant 0 : i32
    %c0_i32_1 = arith.constant 0 : i32
    return %arg0, %c0_i32, %c0_i32_0 : i32, i32, i32
  }
  func.func @transform_1(%arg0: i32) -> (i32, i32, i32) {
    %c0_i32 = arith.constant 0 : i32
    %c0_i32_0 = arith.constant 0 : i32
    %c0_i32_1 = arith.constant 0 : i32
    return %arg0, %c0_i32, %c0_i32_0 : i32, i32, i32
  }
  func.func @transform_2(%arg0: i32) -> (i32, i32) {
    %c0_i32 = arith.constant 0 : i32
    %c0_i32_0 = arith.constant 0 : i32
    %c0_i32_1 = arith.constant 0 : i32
    return %c0_i32, %c0_i32_0 : i32, i32
  }
  func.func @transform_3(%arg0: i32) -> (i32, i32) {
    %c0_i32 = arith.constant 0 : i32
    %c0_i32_0 = arith.constant 0 : i32
    %c0_i32_1 = arith.constant 0 : i32
    return %c0_i32, %c0_i32_0 : i32, i32
  }
  func.func @transform_4(%arg0: i32) -> (i32, i32) {
    %c0_i32 = arith.constant 0 : i32
    %c0_i32_0 = arith.constant 0 : i32
    %c0_i32_1 = arith.constant 0 : i32
    return %c0_i32, %c0_i32_0 : i32, i32
  }
  func.func @transform_5(%arg0: i32) -> (i32, i32) {
    %c0_i32 = arith.constant 0 : i32
    %c0_i32_0 = arith.constant 0 : i32
    %c0_i32_1 = arith.constant 0 : i32
    return %c0_i32, %c0_i32_0 : i32, i32
  }
  func.func @transform_6(%arg0: i32) -> (i32, i32) {
    %c0_i32 = arith.constant 0 : i32
    %c0_i32_0 = arith.constant 0 : i32
    %c0_i32_1 = arith.constant 0 : i32
    return %c0_i32, %c0_i32_0 : i32, i32
  }
  func.func @transform_7(%arg0: i32) -> (i32, i32) {
    %c0_i32 = arith.constant 0 : i32
    %c0_i32_0 = arith.constant 0 : i32
    %c0_i32_1 = arith.constant 0 : i32
    return %c0_i32, %c0_i32_0 : i32, i32
  }
  func.func @transform_8(%arg0: i32) -> (i32, i32) {
    %c0_i32 = arith.constant 0 : i32
    %c0_i32_0 = arith.constant 0 : i32
    %c0_i32_1 = arith.constant 0 : i32
    return %c0_i32, %c0_i32_0 : i32, i32
  }
  func.func @transform_9(%arg0: i32) -> (i32, i32) {
    %c0_i32 = arith.constant 0 : i32
    %c0_i32_0 = arith.constant 0 : i32
    %c0_i32_1 = arith.constant 0 : i32
    return %c0_i32, %c0_i32_0 : i32, i32
  }
  func.func @transform_10(%arg0: i32) -> (i32, i32, i32) {
    %c0_i32 = arith.constant 0 : i32
    %c0_i32_0 = arith.constant 0 : i32
    %c0_i32_1 = arith.constant 0 : i32
    return %arg0, %c0_i32, %c0_i32_0 : i32, i32, i32
  }
}

module attributes {stable_mosaic.version = 11 : i64} {
  func.func @_ffn_add_ln_kernel(%arg0: i32, %arg1: memref<8x32xbf16, #tpu.memory_space<vmem>>, %arg2: memref<32x64xbf16, #tpu.memory_space<vmem>>, %arg3: memref<1x64xf32, #tpu.memory_space<vmem>>, %arg4: memref<64x32xbf16, #tpu.memory_space<vmem>>, %arg5: memref<1x32xf32, #tpu.memory_space<vmem>>, %arg6: memref<1x32xf32, #tpu.memory_space<vmem>>, %arg7: memref<1x32xf32, #tpu.memory_space<vmem>>, %arg8: memref<8x32xbf16, #tpu.memory_space<vmem>>) attributes {dimension_semantics = [#tpu.dimension_semantics<parallel>], iteration_bounds = array<i64: 2>, scalar_prefetch = 0 : i64, scratch_operands = 0 : i64, tpu.core_type = #tpu.core_type<tc>, window_params = [{transform_indices = @transform_0, window_bounds = array<i64: 8, 32>}, {pipeline_mode = #tpu.pipeline_mode<synchronous>, transform_indices = @transform_1, window_bounds = array<i64: 32, 64>}, {pipeline_mode = #tpu.pipeline_mode<synchronous>, transform_indices = @transform_2, window_bounds = array<i64: 1, 64>}, {pipeline_mode = #tpu.pipeline_mode<synchronous>, transform_indices = @transform_3, window_bounds = array<i64: 64, 32>}, {pipeline_mode = #tpu.pipeline_mode<synchronous>, transform_indices = @transform_4, window_bounds = array<i64: 1, 32>}, {pipeline_mode = #tpu.pipeline_mode<synchronous>, transform_indices = @transform_5, window_bounds = array<i64: 1, 32>}, {pipeline_mode = #tpu.pipeline_mode<synchronous>, transform_indices = @transform_6, window_bounds = array<i64: 1, 32>}, {transform_indices = @transform_7, window_bounds = array<i64: 8, 32>}]} {
    %c0 = arith.constant 0 : index
    %c0_0 = arith.constant 0 : index
    %0 = vector.load %arg1[%c0, %c0_0] : memref<8x32xbf16, #tpu.memory_space<vmem>>, vector<8x32xbf16>
    %c0_1 = arith.constant 0 : index
    %c0_2 = arith.constant 0 : index
    %1 = vector.load %arg2[%c0_1, %c0_2] : memref<32x64xbf16, #tpu.memory_space<vmem>>, vector<32x64xbf16>
    %cst = arith.constant dense<0.000000e+00> : vector<8x64xf32>
    %2 = tpu.matmul %0, %1, %cst {dimension_numbers = #tpu.dot_dimension_numbers<[1], [0], [0], [1], [0, 0, 1, 1], [], []>} : vector<8x32xbf16>, vector<32x64xbf16>, vector<8x64xf32> -> vector<8x64xf32>
    %c0_3 = arith.constant 0 : index
    %c0_4 = arith.constant 0 : index
    %3 = vector.load %arg3[%c0_3, %c0_4] : memref<1x64xf32, #tpu.memory_space<vmem>>, vector<1x64xf32>
    %4 = vector.broadcast %3 : vector<1x64xf32> to vector<8x64xf32>
    %5 = arith.addf %2, %4 : vector<8x64xf32>
    %cst_5 = arith.constant 0.000000e+00 : f32
    %6 = vector.broadcast %cst_5 : f32 to vector<8x64xf32>
    %7 = arith.maximumf %5, %6 : vector<8x64xf32>
    %8 = arith.truncf %7 : vector<8x64xf32> to vector<8x64xbf16>
    %c0_6 = arith.constant 0 : index
    %c0_7 = arith.constant 0 : index
    %9 = vector.load %arg4[%c0_6, %c0_7] : memref<64x32xbf16, #tpu.memory_space<vmem>>, vector<64x32xbf16>
    %cst_8 = arith.constant dense<0.000000e+00> : vector<8x32xf32>
    %10 = tpu.matmul %8, %9, %cst_8 {dimension_numbers = #tpu.dot_dimension_numbers<[1], [0], [0], [1], [0, 0, 1, 1], [], []>} : vector<8x64xbf16>, vector<64x32xbf16>, vector<8x32xf32> -> vector<8x32xf32>
    %c0_9 = arith.constant 0 : index
    %c0_10 = arith.constant 0 : index
    %11 = vector.load %arg5[%c0_9, %c0_10] : memref<1x32xf32, #tpu.memory_space<vmem>>, vector<1x32xf32>
    %12 = vector.broadcast %11 : vector<1x32xf32> to vector<8x32xf32>
    %13 = arith.addf %10, %12 : vector<8x32xf32>
    %14 = arith.extf %0 : vector<8x32xbf16> to vector<8x32xf32>
    %15 = arith.addf %14, %13 : vector<8x32xf32>
    %c0_11 = arith.constant 0 : index
    %c0_12 = arith.constant 0 : index
    %16 = vector.load %arg6[%c0_11, %c0_12] : memref<1x32xf32, #tpu.memory_space<vmem>>, vector<1x32xf32>
    %c0_13 = arith.constant 0 : index
    %c0_14 = arith.constant 0 : index
    %17 = vector.load %arg7[%c0_13, %c0_14] : memref<1x32xf32, #tpu.memory_space<vmem>>, vector<1x32xf32>
    %cst_15 = arith.constant dense<0.000000e+00> : vector<8xf32>
    %18 = vector.multi_reduction <add>, %15, %cst_15 [1] : vector<8x32xf32> to vector<8xf32>
    %19 = vector.shape_cast %18 : vector<8xf32> to vector<8x1xf32>
    %cst_16 = arith.constant 3.200000e+01 : f32
    %20 = vector.broadcast %cst_16 : f32 to vector<8x1xf32>
    %21 = arith.divf %19, %20 : vector<8x1xf32>
    %22 = vector.broadcast %21 : vector<8x1xf32> to vector<8x32xf32>
    %23 = arith.subf %15, %22 : vector<8x32xf32>
    %24 = vector.broadcast %21 : vector<8x1xf32> to vector<8x32xf32>
    %25 = arith.subf %15, %24 : vector<8x32xf32>
    %26 = arith.mulf %23, %25 : vector<8x32xf32>
    %cst_17 = arith.constant dense<0.000000e+00> : vector<8xf32>
    %27 = vector.multi_reduction <add>, %26, %cst_17 [1] : vector<8x32xf32> to vector<8xf32>
    %28 = vector.shape_cast %27 : vector<8xf32> to vector<8x1xf32>
    %cst_18 = arith.constant 3.200000e+01 : f32
    %29 = vector.broadcast %cst_18 : f32 to vector<8x1xf32>
    %30 = arith.divf %28, %29 : vector<8x1xf32>
    %31 = vector.broadcast %21 : vector<8x1xf32> to vector<8x32xf32>
    %32 = arith.subf %15, %31 : vector<8x32xf32>
    %cst_19 = arith.constant 9.99999974E-6 : f32
    %33 = vector.broadcast %cst_19 : f32 to vector<8x1xf32>
    %34 = arith.addf %30, %33 : vector<8x1xf32>
    %35 = math.rsqrt %34 : vector<8x1xf32>
    %36 = vector.broadcast %35 : vector<8x1xf32> to vector<8x32xf32>
    %37 = arith.mulf %32, %36 : vector<8x32xf32>
    %38 = vector.broadcast %16 : vector<1x32xf32> to vector<8x32xf32>
    %39 = arith.mulf %37, %38 : vector<8x32xf32>
    %40 = vector.broadcast %17 : vector<1x32xf32> to vector<8x32xf32>
    %41 = arith.addf %39, %40 : vector<8x32xf32>
    %42 = arith.truncf %41 : vector<8x32xf32> to vector<8x32xbf16>
    %c0_20 = arith.constant 0 : index
    %c0_21 = arith.constant 0 : index
    %43 = vector.load %arg8[%c0_20, %c0_21] : memref<8x32xbf16, #tpu.memory_space<vmem>>, vector<8x32xbf16>
    tpu.vector_store %arg8[%c0_20, %c0_21], %42 {strides = array<i32>} : memref<8x32xbf16, #tpu.memory_space<vmem>>, vector<8x32xbf16>,
    return
  }
  func.func @transform_0(%arg0: i32) -> (i32, i32) {
    %c0_i32 = arith.constant 0 : i32
    %c0_i32_0 = arith.constant 0 : i32
    return %arg0, %c0_i32 : i32, i32
  }
  func.func @transform_1(%arg0: i32) -> (i32, i32) {
    %c0_i32 = arith.constant 0 : i32
    %c0_i32_0 = arith.constant 0 : i32
    %c0_i32_1 = arith.constant 0 : i32
    return %c0_i32, %c0_i32_0 : i32, i32
  }
  func.func @transform_2(%arg0: i32) -> (i32, i32) {
    %c0_i32 = arith.constant 0 : i32
    %c0_i32_0 = arith.constant 0 : i32
    %c0_i32_1 = arith.constant 0 : i32
    return %c0_i32, %c0_i32_0 : i32, i32
  }
  func.func @transform_3(%arg0: i32) -> (i32, i32) {
    %c0_i32 = arith.constant 0 : i32
    %c0_i32_0 = arith.constant 0 : i32
    %c0_i32_1 = arith.constant 0 : i32
    return %c0_i32, %c0_i32_0 : i32, i32
  }
  func.func @transform_4(%arg0: i32) -> (i32, i32) {
    %c0_i32 = arith.constant 0 : i32
    %c0_i32_0 = arith.constant 0 : i32
    %c0_i32_1 = arith.constant 0 : i32
    return %c0_i32, %c0_i32_0 : i32, i32
  }
  func.func @transform_5(%arg0: i32) -> (i32, i32) {
    %c0_i32 = arith.constant 0 : i32
    %c0_i32_0 = arith.constant 0 : i32
    %c0_i32_1 = arith.constant 0 : i32
    return %c0_i32, %c0_i32_0 : i32, i32
  }
  func.func @transform_6(%arg0: i32) -> (i32, i32) {
    %c0_i32 = arith.constant 0 : i32
    %c0_i32_0 = arith.constant 0 : i32
    %c0_i32_1 = arith.constant 0 : i32
    return %c0_i32, %c0_i32_0 : i32, i32
  }
  func.func @transform_7(%arg0: i32) -> (i32, i32) {
    %c0_i32 = arith.constant 0 : i32
    %c0_i32_0 = arith.constant 0 : i32
    return %arg0, %c0_i32 : i32, i32
  }
}

module attributes {stable_mosaic.version = 11 : i64} {
  func.func @_linear_kernel(%arg0: i32, %arg1: i32, %arg2: memref<8x32xbf16, #tpu.memory_space<vmem>>, %arg3: memref<32x50xbf16, #tpu.memory_space<vmem>>, %arg4: memref<1x50xf32, #tpu.memory_space<vmem>>, %arg5: memref<8x50xf32, #tpu.memory_space<vmem>>) attributes {dimension_semantics = [#tpu.dimension_semantics<parallel>, #tpu.dimension_semantics<parallel>], iteration_bounds = array<i64: 1, 2>, scalar_prefetch = 0 : i64, scratch_operands = 0 : i64, tpu.core_type = #tpu.core_type<tc>, window_params = [{transform_indices = @transform_0, window_bounds = array<i64: 8, 32>}, {transform_indices = @transform_1, window_bounds = array<i64: 32, 50>}, {transform_indices = @transform_2, window_bounds = array<i64: 1, 50>}, {transform_indices = @transform_3, window_bounds = array<i64: 8, 50>}]} {
    %c0 = arith.constant 0 : index
    %c0_0 = arith.constant 0 : index
    %0 = vector.load %arg2[%c0, %c0_0] : memref<8x32xbf16, #tpu.memory_space<vmem>>, vector<8x32xbf16>
    %c0_1 = arith.constant 0 : index
    %c0_2 = arith.constant 0 : index
    %1 = vector.load %arg3[%c0_1, %c0_2] : memref<32x50xbf16, #tpu.memory_space<vmem>>, vector<32x50xbf16>
    %cst = arith.constant dense<0.000000e+00> : vector<8x50xf32>
    %2 = tpu.matmul %0, %1, %cst {dimension_numbers = #tpu.dot_dimension_numbers<[1], [0], [0], [1], [0, 0, 1, 1], [], []>} : vector<8x32xbf16>, vector<32x50xbf16>, vector<8x50xf32> -> vector<8x50xf32>
    %c0_3 = arith.constant 0 : index
    %c0_4 = arith.constant 0 : index
    %3 = vector.load %arg4[%c0_3, %c0_4] : memref<1x50xf32, #tpu.memory_space<vmem>>, vector<1x50xf32>
    %4 = vector.broadcast %3 : vector<1x50xf32> to vector<8x50xf32>
    %5 = arith.addf %2, %4 : vector<8x50xf32>
    %c0_5 = arith.constant 0 : index
    %c0_6 = arith.constant 0 : index
    %6 = vector.load %arg5[%c0_5, %c0_6] : memref<8x50xf32, #tpu.memory_space<vmem>>, vector<8x50xf32>
    tpu.vector_store %arg5[%c0_5, %c0_6], %5 {strides = array<i32>} : memref<8x50xf32, #tpu.memory_space<vmem>>, vector<8x50xf32>,
    return
  }
  func.func @transform_0(%arg0: i32, %arg1: i32) -> (i32, i32) {
    %c0_i32 = arith.constant 0 : i32
    %c0_i32_0 = arith.constant 0 : i32
    return %arg1, %c0_i32 : i32, i32
  }
  func.func @transform_1(%arg0: i32, %arg1: i32) -> (i32, i32) {
    %c0_i32 = arith.constant 0 : i32
    %c0_i32_0 = arith.constant 0 : i32
    return %c0_i32, %arg0 : i32, i32
  }
  func.func @transform_2(%arg0: i32, %arg1: i32) -> (i32, i32) {
    %c0_i32 = arith.constant 0 : i32
    %c0_i32_0 = arith.constant 0 : i32
    return %c0_i32, %arg0 : i32, i32
  }
  func.func @transform_3(%arg0: i32, %arg1: i32) -> (i32, i32) {
    %c0_i32 = arith.constant 0 : i32
    return %arg1, %arg0 : i32, i32
  }
}

</mosaic_0001>

<bundles_post_ra>
// kernel: transformer_forward.13
= control target key start
LH: loop header
LB: loop body
LE: loop exit
PB: predicated region body
PF: predicated region fallthrough
CT: control target
= control target key end

     0   :  { %8 = vsyncpa [#allocation3], 0  ;;  %s703_s0 = inlined_call_operand.vmem [shape: bf16[16,32], index: 0, kind: input, shape index: {}]   ;;  %s704_s1 = inlined_call_operand.vmem [shape: bf16[32,50], index: 1, kind: input, shape index: {}]   ;;  %s705_s2 = inlined_call_operand.vmem [shape: f32[1,50], index: 2, kind: input, shape index: {}]   ;;  %s706_s3 = inlined_call_operand.hbm [shape: f32[16,50], index: 3, kind: output, shape index: {}]  }
   0x1   :  { %10 = vsyncpa [#allocation3 + $0x1], 0  ;;  %s582_s12 = smov 0   ;;  %s584_s13 = smov 0  }
   0x2   :  { %s586_s14 = smov 0   ;;  %s588_s15 = smov 0  }
   0x3   :  { %s590_s16 = smov 0   ;;  %s592_s17 = smov 0  }
   0x4 LB: > { %s392_s18 = sadd.s32 4294967295, %s557_s17   ;;  %s393_s19 = sadd.s32 4294967294, %s557_s17   ;;  %s557_s17 = sphi %s592_s17, %s16_s17   ;;  %s553_s16 = sphi %s590_s16, %s713_s16   ;;  %s549_s15 = sphi %s588_s15, %s712_s15   ;;  %s545_s14 = sphi %s586_s14, %s711_s14   ;;  %s541_s13 = sphi %s584_s13, %s710_s13   ;;  %s537_s12 = sphi %s582_s12, %s709_s12  }
   0x5   : > { %s25_s20 = sadd.s32 1, %s553_s16  ;;  %s115_s21 = sadd.s32 1, %s545_s14 }
   0x6   : > { %p26_p0 = scmp.ge.s32.totalorder %s25_s20, 2  ;;  %p125_p1 = scmp.ne.s32.totalorder %s545_s14, %s541_s13 }
   0x7   : > { %p126_p2 = scmp.eq.s32.totalorder %s392_s18, 1  ;;  %p131_p3 = scmp.ne.s32.totalorder %s541_s13, %s537_s12 }
   0x8   : > { %s715_s20 = smov (%p26_p0, %s25_s20), 0  ;;  %p132_p5 = scmp.eq.s32.totalorder %s393_s19, 1 }
   0x9   : > { %p622_p4 = por %p126_p2, %p125_p1  ;;  %s110_s23 = ssub.s32 %s553_s16, %s715_s20 }
   0xa   : > { %p398_p6 = scmp.ge.s32.totalorder %s557_s17, 1  ;;  %p113_p7 = scmp.eq.s32.totalorder %s110_s23, 0 }
   0xb   : > { %p629_p8 = por %p132_p5, %p131_p3  ;;  %p170_p9 = scmp.lt.s32.totalorder %s557_s17, 3 }
   0xc   : > { %s635_s25 = scalar_select %p113_p7, %s545_s14, %s115_s21  }
   0xd   : > { %p171_p10 = pnand %p398_p6, %p170_p9 }
   0xe   : > { %v477_v0 = vld [vmem:[%s704_s1] sm:$0xff] (!%p171_p10)   ;;  %v559_v1 = vmov (!%p171_p10), 0.0   ;;  %v478_v2 = vld [vmem:[%s704_s1 + $0x8] sm:$0xff] (!%p171_p10)   ;;  %vm560_vm0 = vmmov (!%p171_p10), 0   ;;  %p200_p11 = scmp.lt.s32.totalorder (!%p171_p10), %s549_s15, 1  ;;  %vm236_vm1 = vcmask (!%p171_p10), 261120  }
   0xf   : > { %174 = sbr.rel (%p171_p10) target bundleno = 255 (0xff), region = 32  ;;  %412 = vmatprep.subr.bf16.mxu0 (!%p171_p10), %v559_v1  ;;  %416 = vmatprep.mubr.msk.bf16.mxu0 (!%p171_p10), %vm560_vm0, %v559_v1  ;;  %s197_s8 = sand.u32 (!%p171_p10), 1, %s541_s13   ;;  %v401_v4 = vld [vmem:[%s705_s2] ss:$0 sm:$0xff] (!%p171_p10)  ;;  %vm280_vm2 = vcmask (!%p171_p10), 408576  }
  0x10   : > { %413 = vmatpush3.bf16.msra.mxu0 (!%p171_p10), %v477_v0  ;;  %s399_s9 = sshll.u32 (!%p171_p10), %s197_s8, 3  ;;  %s406_s18 = sshll.u32 (!%p171_p10), %s549_s15, 7 }
  0x11   : > { %414 = vmatprep.subr.bf16.mxu0 (!%p171_p10), %v559_v1  ;;  %s199_s19 = scalar_lea.vmem (!%p171_p10), [#allocation2], %s399_s9  ;;  %s656_s27 = scalar_lea.hbm (!%p171_p10), %s706_s3, %s406_s18 }
  0x12   : > { %s297_s21 = sshll.u32 (!%p171_p10), %s199_s19, 4  ;;  %s561_s29 = smov (!%p171_p10), [#allocation2]   ;;  %s658_s21 = int_to_ptr.vmem [resolvable:$true] %s297_s21 }
  0x13   : > { %s479_s28 = scalar_lea.vmem (!%p171_p10), %s658_s21, 128 }
  0x14   : > { %415 = vmatpush3.bf16.msra.mxu0 (!%p171_p10), %v478_v2  ;;  %p480_p12 = scmp.ne.s32.totalorder (!%p171_p10), %s658_s21, %s479_s28 }
  0x16   : > { %s201_s30 = scalar_select %p200_p11, %s549_s15, 1 }
  0x17   : > { %s283_s15 = scalar_lea.sflag [#allocation3], %s197_s8  ;;  %p481_p13 = pnand %p480_p12, %p622_p4 }
  0x18   : > { %s400_s4 = sshll.u32 %s201_s30, 2  ;;  %s483_s30 = sshll.u32 %s561_s29, 4  ;;  %s484_s30 = int_to_ptr.vmem [resolvable:$false] %s483_s30 }
  0x19   : > { %s203_s7 = scalar_lea.vmem %s703_s0, %s400_s4  ;;  %p482_p0 = pneg %p481_p13 }
  0x1a   : > { %v212_v3 = vld [vmem:[%s203_s7] sm:$0xf]  ;;  %s485_s4 = scalar_lea.vmem %s484_s30, 256  ;;  %p486_p1 = scmp.lt.s32.totalorder %s658_s21, %s484_s30 }
  0x1b   : > { %417 = vmatmul.mubr.msk.bf16.vlgmr.msra.gmra.mrb[0].mxu0 %vm236_vm1, %v212_v3  ;;  %p487_p2 = scmp.lt.s32.totalorder %s485_s4, %s479_s28 }
  0x1d   : > { %p488_p3 = por %p487_p2, %p486_p1 }
  0x1f   : > { %p489_p5 = pnand %p488_p3, %p482_p0 }
  0xee   : > { %v274_v5 = vpop.f32.mrb[0].mxu0 }
  0xef   : > { %v275_v6 = vadd.f32 %v401_v4, %v274_v5  ;;  %v418_v7 = vpop.f32.mrb[1].mxu0 }
  0xf0   : > { %v277_v8 = vpop.f32.mrb[2].mxu0 }
  0xf1   : > { %v419_v9 = vpop.f32.mrb[3].mxu0  ;;  %281 = vst.msk [vmem:[%s199_s19] sm:$0xff] %vm280_vm2, %v275_v6 }
  0xf2   : > { %492 = shalt.err (!%p489_p5)
}
  0xf3   : > { %s493_s5 = scalar_lea.hbm %s656_s27, 128  ;;  %s497_s8 = scalar_lea.hbm %s706_s3, 256 }
  0xf4   : > { %p494_p6 = scmp.ne.s32.totalorder %s656_s27, %s493_s5  ;;  %p498_p10 = scmp.lt.u32.totalorder %s656_s27, %s706_s3 }
  0xf5   : > { %p499_p11 = scmp.lt.u32.totalorder %s497_s8, %s493_s5  ;;  %p501_p13 = scmp.lt.u32.totalorder %s493_s5, %s656_s27 }
  0xf6   : > { %p495_p7 = pnand %p494_p6, %p622_p4 }
  0xf7   : > { %p500_p12 = por %p499_p11, %p498_p10 }
  0xf8   : > { %p496_p9 = pneg %p495_p7 }
  0xf9   : > { %p502_p0 = por %p501_p13, %p500_p12 }
  0xfb   : > { %p503_p1 = pnand %p502_p0, %p496_p9 }
  0xfd   : > { %506 = shalt.err (!%p503_p1)
}
  0xfe   : > { %420 = dma.vmem_to_hbm [thread:$0]  (%p622_p4), %s658_s21, 128, %s656_s27, %s283_s15  }
  0xff PF: > { %p426_p2 = scmp.ge.s32.totalorder %s557_s17, 2  ;;  %s309_s11 = sand.u32 1, %s537_s12  }
 0x100   : > { %s310_s18 = scalar_lea.sflag [#allocation3], %s309_s11 }
 0x101   : > { %p423_p3 = pnand %p426_p2, %p629_p8 }
 0x103   : > { %532 = dma.done.wait (!%p423_p3), %s310_s18, 128  }
 0x104   : > { %534 = vsyncadd (!%p423_p3), %s310_s18, 4294967168  ;;  %s16_s17 = sadd.s32 1, %s557_s17   ;;  %s709_s12 = smov %s541_s13 }
 0x105   : > { %p13_p5 = scmp.ge.s32.totalorder %s16_s17, 4   ;;  %s710_s13 = smov %s545_s14 }
 0x106   : > { %s711_s14 = smov %s635_s25  ;;  %s712_s15 = smov %s553_s16 }
 0x107   : > { %s713_s16 = smov %s715_s20  ;;  %15 = sbr.rel (!%p13_p5) target bundleno = 4 (0x4), region = 73 }
 0x10e   :  { %315 = vsyncpa [#allocation3], 1 }
 0x10f   :  { %317 = vsyncpa [#allocation3 + $0x1], 1 }

// kernel: transformer_forward.9
= control target key start
LH: loop header
LB: loop body
LE: loop exit
PB: predicated region body
PF: predicated region fallthrough
CT: control target
= control target key end

     0   :  { %s633_s24 = smov 0   ;;  %s690_s0 = inlined_call_operand.vmem [shape: bf16[16,32], index: 0, kind: input, shape index: {}]   ;;  %s691_s1 = inlined_call_operand.vmem [shape: bf16[32,64], index: 1, kind: input, shape index: {}]   ;;  %s692_s2 = inlined_call_operand.vmem [shape: f32[1,64], index: 2, kind: input, shape index: {}]   ;;  %s693_s3 = inlined_call_operand.vmem [shape: bf16[64,32], index: 3, kind: input, shape index: {}]   ;;  %s694_s4 = inlined_call_operand.vmem [shape: f32[1,32], index: 4, kind: input, shape index: {}]   ;;  %s695_s5 = inlined_call_operand.vmem [shape: f32[1,32], index: 5, kind: input, shape index: {}]   ;;  %s696_s6 = inlined_call_operand.vmem [shape: f32[1,32], index: 6, kind: input, shape index: {}]   ;;  %s697_s7 = inlined_call_operand.vmem [shape: bf16[16,32], index: 7, kind: output, shape index: {}]  }
   0x1 LB: > { %s516_s25 = sadd.s32 4294967295, %s589_s24   ;;  %p520_p0 = scmp.ge.s32.totalorder %s589_s24, 1  ;;  %s589_s24 = sphi %s633_s24, %s17_s24  }
   0x2   : > { %p236_p1 = scmp.lt.s32.totalorder %s589_s24, 3 }
   0x4   : > { %p237_p2 = pnand %p520_p0, %p236_p1 }
   0x5   : > { %v575_v0 = vld [vmem:[%s691_s1] sm:$0xff] (!%p237_p2)   ;;  %v591_v1 = vmov (!%p237_p2), 0.0   ;;  %v576_v2 = vld [vmem:[%s691_s1 + $0x8] sm:$0xff] (!%p237_p2)   ;;  %vm592_vm0 = vmmov (!%p237_p2), 0   ;;  %p266_p3 = scmp.lt.s32.totalorder (!%p237_p2), %s516_s25, 1  ;;  %vm299_vm1 = vcmask (!%p237_p2), 261120  }
   0x6   : > { %240 = sbr.rel (%p237_p2) target bundleno = 767 (0x2ff), region = 48  ;;  %545 = vmatprep.subr.bf16.mxu0 (!%p237_p2), %v591_v1  ;;  %553 = vmatprep.subr.bf16.mxu1 (!%p237_p2), %v591_v1  ;;  %v577_v3 = vld [vmem:[%s693_s3] sm:$0xff] (!%p237_p2)   ;;  %v578_v4 = vld [vmem:[%s693_s3 + $0x8] sm:$0xff] (!%p237_p2)   ;;  %v579_v6 = vld [vmem:[%s693_s3 + $0x10] sm:$0xff] (!%p237_p2)   ;;  %vm384_vm2 = vcmask (!%p237_p2), 523264   ;;  %vm461_vm3 = vcmask (!%p237_p2), 257024  }
   0x7   : > { %546 = vmatpush3.bf16.msra.mxu0 (!%p237_p2), %v575_v0  ;;  %549 = vmatprep.mubr.msk.bf16.mxu0 (!%p237_p2), %vm592_vm0, %v591_v1  ;;  %v580_v7 = vld [vmem:[%s693_s3 + $0x18] sm:$0xff] (!%p237_p2)   ;;  %v523_v8 = vld [vmem:[%s692_s2] ss:$0 sm:$0xff] (!%p237_p2) }
   0x8   : > { %547 = vmatprep.subr.bf16.mxu0 (!%p237_p2), %v591_v1  ;;  %561 = vmatprep.mubr.msk.bf16.mxu1 (!%p237_p2), %vm592_vm0, %v591_v1  ;;  %v527_v16 = vld [vmem:[%s694_s4] ss:$0 sm:$0xff] (!%p237_p2) }
   0x9   : > { %554 = vmatpush3.bf16.msra.mxu1 (!%p237_p2), %v577_v3  ;;  %v533_v34 = vld [vmem:[%s695_s5] ss:$0 sm:$0xff] (!%p237_p2) }
   0xa   : > { %555 = vmatprep.subr.bf16.mxu1 (!%p237_p2), %v591_v1  ;;  %v534_v36 = vld [vmem:[%s696_s6] ss:$0 sm:$0xff] (!%p237_p2) }
   0xb   : > { %548 = vmatpush3.bf16.msra.mxu0 (!%p237_p2), %v576_v2 }
   0xd   : > { %s699_s25 = smov (!%p266_p3, %s516_s25), 1  ;;  %556 = vmatpush3.bf16.msra.mxu1 %v578_v4 }
   0xe   : > { %s521_s11 = sshll.u32 %s699_s25, 2  ;;  %557 = vmatprep.subr.bf16.mxu1 %v591_v1 }
   0xf   : > { %s269_s14 = scalar_lea.vmem %s690_s0, %s521_s11  ;;  %s273_s8 = scalar_lea.vmem %s697_s7, %s521_s11 }
  0x10   : > { %v275_v5 = vld [vmem:[%s269_s14] sm:$0xf] }
  0x11   : > { %550 = vmatmul.mubr.msk.bf16.vlgmr.msra.gmra.mrb[0].mxu0 %vm299_vm1, %v275_v5  ;;  %558 = vmatpush3.bf16.msra.mxu1 %v579_v6  ;;  %v428_v17 = vunpack.c.l.bf16 %v275_v5 }
  0x12   : > { %559 = vmatprep.subr.bf16.mxu1 %v591_v1 }
  0x15   : > { %560 = vmatpush3.bf16.msra.mxu1 %v580_v7 }
  0xe4   : > { %v337_v9 = vpop.f32.mrb[0].mxu0 }
  0xe5   : > { %v338_v10 = vadd.f32 %v523_v8, %v337_v9  ;;  %v551_v11 = vpop.f32.mrb[1].mxu0 }
  0xe6   : > { %v340_v12 = vpop.f32.mrb[2].mxu0 }
  0xe7   : > { %v343_v13 = vmax.f32 %v338_v10, 0.0  ;;  %v552_v14 = vpop.f32.mrb[3].mxu0 }
  0xe9   : > { %v344_v15 = vpack.c.bf16 %v343_v13, %v343_v13 }
  0xeb   : > { %562 = vmatmul.mubr.msk.bf16.vlgmr.msra.gmra.mrb[0].mxu1 %vm384_vm2, %v344_v15 }
 0x1be   : > { %v422_v18 = vpop.f32.mrb[0].mxu1 }
 0x1bf   : > { %v423_v19 = vadd.f32 %v527_v16, %v422_v18  ;;  %v563_v20 = vpop.f32.mrb[1].mxu1 }
 0x1c0   : > { %v425_v21 = vpop.f32.mrb[2].mxu1 }
 0x1c1   : > { %v564_v22 = vpop.f32.mrb[3].mxu1  ;;  %v429_v23 = vadd.f32 %v428_v17, %v423_v19 }
 0x1c3   : > { %v432_v24 = vsel %vm299_vm1, %v429_v23, 0.0 }
 0x1c4   : > { %433 = vadd.xlane.f32.xlu0 %v432_v24 }
 0x251   : > { %v434_v25 = vpop.xlane.xlu0 %433 }
 0x252   : > { %v436_v26 = vmul.f32 0.03125, %v434_v25 }
 0x254   : > { %v437_v27 = vsub.f32 %v429_v23, %v436_v26 }
 0x256   : > { %v438_v28 = vmul.f32 %v437_v27, %v437_v27 }
 0x258   : > { %v439_v29 = vsel %vm299_vm1, %v438_v28, 0.0 }
 0x259   : > { %440 = vadd.xlane.f32.xlu0 %v439_v29 }
 0x2e6   : > { %v441_v30 = vpop.xlane.xlu0 %440 }
 0x2e7   : > { %v442_v31 = vmul.f32 0.03125, %v441_v30 }
 0x2e9   : > { %v443_v32 = vadd.f32 1e-05, %v442_v31 }
 0x2eb   : > { %581 = vrsqrt.f32 %v443_v32 }
 0x2f5   : > { %v582_v33 = vpop.eup %581 }
 0x2f6   : > { %v445_v35 = vmul.f32 %v582_v33, %v437_v27 }
 0x2f8   : > { %v452_v37 = vmul.f32 %v533_v34, %v445_v35 }
 0x2fa   : > { %v459_v38 = vadd.f32 %v534_v36, %v452_v37 }
 0x2fc   : > { %v460_v39 = vpack.c.bf16 %v459_v38, %v459_v38 }
 0x2fe   : > { %462 = vst.msk [vmem:[%s273_s8] sm:$0xf] %vm461_vm3, %v460_v39 }
 0x2ff PF: > { %s17_s24 = sadd.s32 1, %s589_s24  }
 0x300   : > { %p14_p4 = scmp.ge.s32.totalorder %s17_s24, 4  }
 0x302   :  { %16 = sbr.rel (!%p14_p4) target bundleno = 1 (0x1), region = 78 }

// kernel: transformer_forward.7
= control target key start
LH: loop header
LB: loop body
LE: loop exit
PB: predicated region body
PF: predicated region fallthrough
CT: control target
= control target key end

     0   :  { %s1256_s27 = smov 0   ;;  %s1384_s0 = inlined_call_operand.vmem [shape: bf16[2,8,32], index: 0, kind: input, shape index: {}]   ;;  %s1385_s1 = inlined_call_operand.vmem [shape: f32[2,1,8], index: 1, kind: input, shape index: {}]   ;;  %s1386_s2 = inlined_call_operand.vmem [shape: bf16[32,96], index: 2, kind: input, shape index: {}]   ;;  %s1387_s3 = inlined_call_operand.vmem [shape: f32[1,96], index: 3, kind: input, shape index: {}]   ;;  %s1388_s4 = inlined_call_operand.vmem [shape: bf16[32,32], index: 4, kind: input, shape index: {}]   ;;  %s1389_s5 = inlined_call_operand.vmem [shape: f32[1,32], index: 5, kind: input, shape index: {}]   ;;  %s1390_s6 = inlined_call_operand.vmem [shape: f32[1,32], index: 6, kind: input, shape index: {}]   ;;  %s1391_s7 = inlined_call_operand.vmem [shape: f32[1,32], index: 7, kind: input, shape index: {}]   ;;  %s1392_s8 = inlined_call_operand.vmem [shape: bf16[2,8,32], index: 8, kind: output, shape index: {}]  }
   0x1 LB: > { %s1027_s28 = sadd.s32 4294967295, %s1193_s27   ;;  %p1031_p0 = scmp.ge.s32.totalorder %s1193_s27, 1  ;;  %s1193_s27 = sphi %s1256_s27, %s18_s27  }
   0x2   : > { %p269_p1 = scmp.lt.s32.totalorder %s1193_s27, 3 }
   0x4   : > { %p270_p2 = pnand %p1031_p0, %p269_p1 }
   0x5   : > { %v1165_v0 = vld [vmem:[%s1386_s2] sm:$0xff] (!%p270_p2)   ;;  %v1195_v1 = vmov (!%p270_p2), 0.0   ;;  %v1166_v2 = vld [vmem:[%s1386_s2 + $0x8] sm:$0xff] (!%p270_p2)   ;;  %vm1196_vm0 = vmmov (!%p270_p2), 0   ;;  %p304_p3 = scmp.lt.s32.totalorder (!%p270_p2), %s1027_s28, 1  ;;  %vm340_vm1 = vcmask (!%p270_p2), 261120   ;;  %v384_v24 = vlaneseq (!%p270_p2) }
   0x6   : > { %273 = sbr.rel (%p270_p2) target bundleno = 1817 (0x719), region = 52  ;;  %1077 = vmatprep.subr.bf16.mxu0 (!%p270_p2), %v1195_v1  ;;  %1085 = vmatprep.subr.bf16.mxu1 (!%p270_p2), %v1195_v1  ;;  %v1034_v4 = vld [vmem:[%s1387_s3] ss:$0 sm:$0xff] (!%p270_p2)  ;;  %s1197_s17 = smov (!%p270_p2), 96   ;;  %vm404_vm2 = vcmask (!%p270_p2), 64512   ;;  %vm468_vm4 = vcmask (!%p270_p2), 1043456  }
   0x7   : > { %1078 = vmatpush3.bf16.msra.mxu0 (!%p270_p2), %v1165_v0  ;;  %1081 = vmatprep.mubr.msk.bf16.mxu0 (!%p270_p2), %vm1196_vm0, %v1195_v1  ;;  %s1198_s18 = smov (!%p270_p2), 120   ;;  %s1199_s19 = smov (!%p270_p2), 88   ;;  %v385_v25 = vshrl.u32 (!%p270_p2), %v384_v24, 7  ;;  %v387_v26 = vand.u32 (!%p270_p2), 127, %v384_v24  ;;  %vm628_vm5 = vcmask (!%p270_p2), 130112   ;;  %vm744_vm6 = vcmask (!%p270_p2), 195712  }
   0x8   : > { %1079 = vmatprep.subr.bf16.mxu0 (!%p270_p2), %v1195_v1  ;;  %1087 = vmatprep.mubr.msk.bf16.mxu1 (!%p270_p2), %vm1196_vm0, %v1195_v1  ;;  %s1200_s20 = smov (!%p270_p2), 80   ;;  %s1201_s21 = smov (!%p270_p2), 112   ;;  %vm860_vm7 = vcmask (!%p270_p2), 261312   ;;  %vm963_vm8 = vcmask (!%p270_p2), 257024  }
   0x9   : > { %s1202_s22 = smov (!%p270_p2), 72   ;;  %s1203_s23 = smov (!%p270_p2), 104   ;;  %vm388_vm3 = vcmp.gt.s32.totalorder (!%p270_p2), %v387_v26, %v385_v25 }
   0xa   : > { %v389_v28 = vsel (!%p270_p2), %vm388_vm3, -1e+30, %v1195_v1  ;;  %s1204_s29 = smov (!%p270_p2), 56   ;;  %s1205_s30 = smov (!%p270_p2), 64  }
   0xb   : > { %1080 = vmatpush3.bf16.msra.mxu0 (!%p270_p2), %v1166_v2  ;;  %s1206_s9 = smov (!%p270_p2), 40   ;;  %s1207_s10 = smov (!%p270_p2), 48  }
   0xc   : > { %1091 = vmatprep.subr.bf16.mxu0 (!%p270_p2), %v1195_v1  ;;  %s1208_s12 = smov (!%p270_p2), 8  }
   0xd   : > { %s1394_s28 = smov (!%p304_p3, %s1027_s28), 1 }
   0xe   : > { %s1032_s11 = sshll.u32 %s1394_s28, 2  ;;  %s310_s26 = scalar_lea.vmem %s1385_s1, %s1394_s28 }
   0xf   : > { %s307_s14 = scalar_lea.vmem %s1384_s0, %s1032_s11  ;;  %v1038_v27 = vld [vmem:[%s310_s26] ss:$0 sm:$0xff] }
  0x10   : > { %v1286_v3 = vld [vmem:[%s307_s14] sm:$0xf]  ;;  %v397_v29 = vadd.f32 %v1038_v27, %v389_v28 }
  0x11   : > { %1082 = vmatmul.mubr.msk.bf16.vlgmr.msra.gmra.mrb[0].mxu0 %vm340_vm1, %v1286_v3 }
  0x12   : > { %1093 = vmatprep.mubr.msk.bf16.mxu0 %vm1196_vm0, %v1195_v1 }
  0xe4   : > { %v378_v5 = vpop.f32.mrb[0].mxu0 }
  0xe5   : > { %v379_v6 = vadd.f32 %v1034_v4, %v378_v5  ;;  %v1083_v7 = vpop.f32.mrb[1].mxu0 }
  0xe6   : > { %v381_v8 = vpop.f32.mrb[2].mxu0 }
  0xe7   : > { %v398_v9 = vmul.f32 0.35355338, %v379_v6  ;;  %v1295_v10 = vpack.c.bf16 %v379_v6, %v379_v6  ;;  %v1084_v11 = vpop.f32.mrb[3].mxu0 }
  0xe9   : > { %v399_v12 = vpack.c.bf16 %v398_v9, %v398_v9  ;;  %402 = vrot.lane.b32.xlu0 %v1295_v10, %s1197_s17  ;;  %s1209_s17 = smov 16  }
  0xeb   : > { %514 = vrot.lane.b32.xlu1 %v399_v12, %s1198_s18  ;;  %s1210_s18 = smov 24  }
  0xed   : > { %516 = vrot.lane.b32.xlu0 %v1295_v10, %s1199_s19 }
  0xef   : > { %632 = vrot.lane.b32.xlu1 %v1295_v10, %s1200_s20 }
  0xf1   : > { %630 = vrot.lane.b32.xlu0 %v399_v12, %s1201_s21 }
  0xf3   : > { %748 = vrot.lane.b32.xlu1 %v1295_v10, %s1202_s22 }
  0xf5   : > { %746 = vrot.lane.b32.xlu0 %v399_v12, %s1203_s23 }
 0x15b   : > { %v403_v13 = vpop.permute.xlu0 %402 }
 0x15c   : > { %v409_v14 = vsel %vm404_vm2, %v403_v13, 0 }
 0x15d   : > { %1086 = vmatpush3.bf16.xpose.msra.mxu1 %v409_v14  ;;  %v515_v16 = vpop.permute.xlu1 %514 }
 0x15e   : > { %1097 = vmatprep.subr.bf16.mxu1 %v1195_v1 }
 0x15f   : > { %v517_v15 = vpop.permute.xlu0 %516 }
 0x160   : > { %v522_v17 = vsel %vm404_vm2, %v517_v15, 0 }
 0x161   : > { %v633_v18 = vpop.permute.xlu1 %632 }
 0x162   : > { %v638_v19 = vsel %vm404_vm2, %v633_v18, 0 }
 0x163   : > { %v631_v21 = vpop.permute.xlu0 %630 }
 0x164   : > { %1088 = vmatmul.mubr.msk.bf16.vlgmr.msra.gmra.mrb[0].mxu1 %vm404_vm2, %v399_v12 }
 0x165   : > { %1098 = vmatpush3.bf16.xpose.msra.mxu1 %v522_v17  ;;  %1099 = vmatprep.mubr.msk.bf16.mxu1 %vm1196_vm0, %v1195_v1  ;;  %v749_v20 = vpop.permute.xlu1 %748 }
 0x166   : > { %1109 = vmatprep.subr.bf16.mxu1 %v1195_v1  ;;  %v754_v22 = vsel %vm404_vm2, %v749_v20, 0 }
 0x167   : > { %v747_v23 = vpop.permute.xlu0 %746 }
 0x16c   : > { %1100 = vmatmul.mubr.msk.bf16.vlgmr.msra.gmra.mrb[4].mxu1 %vm404_vm2, %v515_v16 }
 0x16d   : > { %1110 = vmatpush3.bf16.xpose.msra.mxu1 %v638_v19  ;;  %1111 = vmatprep.mubr.msk.bf16.mxu1 %vm1196_vm0, %v1195_v1 }
 0x16e   : > { %1121 = vmatprep.subr.bf16.mxu1 %v1195_v1 }
 0x174   : > { %1112 = vmatmul.mubr.msk.bf16.vlgmr.msra.gmra.mrb[8].mxu1 %vm404_vm2, %v631_v21 }
 0x175   : > { %1122 = vmatpush3.bf16.xpose.msra.mxu1 %v754_v22  ;;  %1123 = vmatprep.mubr.msk.bf16.mxu1 %vm1196_vm0, %v1195_v1 }
 0x176   : > { %1133 = vmatprep.subr.bf16.mxu1 %v1195_v1 }
 0x17c   : > { %1124 = vmatmul.mubr.msk.bf16.vlgmr.msra.gmra.mrb[12].mxu1 %vm404_vm2, %v747_v23 }
 0x17d   : > { %1137 = vmatprep.mubr.msk.bf16.mxu1 %vm1196_vm0, %v1195_v1 }
 0x237   : > { %v445_v30 = vpop.f32.mrb[0].mxu1 }
 0x238   : > { %v446_v31 = vadd.f32 %v445_v30, %v397_v29  ;;  %v1089_v32 = vpop.f32.mrb[1].mxu1 }
 0x239   : > { %v448_v33 = vpop.f32.mrb[2].mxu1 }
 0x23a   : > { %v1090_v34 = vpop.f32.mrb[3].mxu1  ;;  %v451_v35 = vsel %vm404_vm2, %v446_v31, -inf }
 0x23b   : > { %452 = vmax.xlane.f32.xlu1 %v451_v35 }
 0x23f   : > { %v558_v36 = vpop.f32.mrb[4].mxu1 }
 0x240   : > { %v559_v37 = vadd.f32 %v558_v36, %v397_v29  ;;  %v1101_v38 = vpop.f32.mrb[5].mxu1 }
 0x241   : > { %v561_v39 = vpop.f32.mrb[6].mxu1 }
 0x242   : > { %v1102_v40 = vpop.f32.mrb[7].mxu1  ;;  %v564_v41 = vsel %vm404_vm2, %v559_v37, -inf }
 0x243   : > { %565 = vmax.xlane.f32.xlu0 %v564_v41 }
 0x247   : > { %v674_v42 = vpop.f32.mrb[8].mxu1 }
 0x248   : > { %v675_v43 = vadd.f32 %v674_v42, %v397_v29  ;;  %v1113_v44 = vpop.f32.mrb[9].mxu1 }
 0x249   : > { %v677_v45 = vpop.f32.mrb[10].mxu1  ;;  %v1167_v44 = vld [vmem:[%s1388_s4] sm:$0xff]  }
 0x24a   : > { %v1114_v46 = vpop.f32.mrb[11].mxu1  ;;  %v680_v47 = vsel %vm404_vm2, %v675_v43, -inf  ;;  %1134 = vmatpush3.bf16.msra.mxu1 %v1167_v44  ;;  %v1168_v45 = vld [vmem:[%s1388_s4 + $0x8] sm:$0xff]  }
 0x24b   : > { %681 = vmax.xlane.f32.xlu0 %v680_v47  ;;  %1135 = vmatprep.subr.bf16.mxu1 %v1195_v1 }
 0x24e   : > { %1136 = vmatpush3.bf16.msra.mxu1 %v1168_v45 }
 0x24f   : > { %v790_v48 = vpop.f32.mrb[12].mxu1 }
 0x250   : > { %v791_v49 = vadd.f32 %v790_v48, %v397_v29  ;;  %v1125_v50 = vpop.f32.mrb[13].mxu1 }
 0x251   : > { %v793_v51 = vpop.f32.mrb[14].mxu1 }
 0x252   : > { %v1126_v52 = vpop.f32.mrb[15].mxu1  ;;  %v796_v53 = vsel %vm404_vm2, %v791_v49, -inf }
 0x253   : > { %797 = vmax.xlane.f32.xlu1 %v796_v53 }
 0x2c8   : > { %v453_v54 = vpop.xlane.xlu1 %452 }
 0x2c9   : > { %v454_v55 = vsub.f32 %v446_v31, %v453_v54 }
 0x2cb   : > { %v455_v56 = vmul.f32 1.442695, %v454_v55 }
 0x2cd   : > { %1169 = vpow2.f32 %v455_v56 }
 0x2d0   : > { %v566_v57 = vpop.xlane.xlu0 %565 }
 0x2d1   : > { %v567_v58 = vsub.f32 %v559_v37, %v566_v57 }
 0x2d3   : > { %v568_v59 = vmul.f32 1.442695, %v567_v58  ;;  %v1047_v58 = vld [vmem:[%s1389_s5] ss:$0 sm:$0xff] }
 0x2d5   : > { %1171 = vpow2.f32 %v568_v59  ;;  %v930_v59 = vunpack.c.l.bf16 %v1286_v3 }
 0x2d7   : > { %v1170_v60 = vpop.eup %1169 }
 0x2d8   : > { %v682_v61 = vpop.xlane.xlu0 %681  ;;  %v457_v62 = vsel %vm404_vm2, %v1170_v60, 0.0 }
 0x2d9   : > { %v683_v63 = vsub.f32 %v675_v43, %v682_v61  ;;  %458 = vadd.xlane.f32.xlu0 %v457_v62 }
 0x2db   : > { %v684_v0 = vmul.f32 1.442695, %v683_v63 }
 0x2dd   : > { %1173 = vpow2.f32 %v684_v0 }
 0x2df   : > { %v1172_v2 = vpop.eup %1171 }
 0x2e0   : > { %v570_v4 = vsel %vm404_vm2, %v1172_v2, 0.0  ;;  %v798_v7 = vpop.xlane.xlu1 %797 }
 0x2e1   : > { %571 = vadd.xlane.f32.xlu1 %v570_v4  ;;  %v799_v8 = vsub.f32 %v791_v49, %v798_v7 }
 0x2e3   : > { %v800_v9 = vmul.f32 1.442695, %v799_v8 }
 0x2e5   : > { %1175 = vpow2.f32 %v800_v9 }
 0x2e7   : > { %v1174_v5 = vpop.eup %1173 }
 0x2e8   : > { %v686_v6 = vsel %vm404_vm2, %v1174_v5, 0.0 }
 0x2e9   : > { %687 = vadd.xlane.f32.xlu0 %v686_v6 }
 0x2ef   : > { %v1176_v11 = vpop.eup %1175 }
 0x2f0   : > { %v802_v12 = vsel %vm404_vm2, %v1176_v11, 0.0 }
 0x2f2   : > { %576 = vrot.lane.b32.xlu1 %v1295_v10, %s1204_s29  ;;  %s314_s29 = scalar_lea.vmem %s1392_s8, %s1032_s11 }
 0x2ff   : > { %463 = vrot.lane.b32.xlu0 %v1295_v10, %s1205_s30 }
 0x303   : > { %808 = vrot.lane.b32.xlu0 %v1295_v10, %s1206_s9 }
 0x316   : > { %803 = vadd.xlane.f32.xlu1 %v802_v12 }
 0x327   : > { %692 = vrot.lane.b32.xlu1 %v1295_v10, %s1207_s10 }
 0x366   : > { %v459_v13 = vpop.xlane.xlu0 %458 }
 0x367   : > { %1177 = vrcp.f32 %v459_v13 }
 0x36e   : > { %v572_v14 = vpop.xlane.xlu1 %571 }
 0x36f   : > { %1179 = vrcp.f32 %v572_v14  ;;  %v1051_v14 = vld [vmem:[%s1390_s6] ss:$0 sm:$0xff] }
 0x371   : > { %v1178_v15 = vpop.eup %1177 }
 0x372   : > { %v461_v17 = vmul.f32 %v1178_v15, %v1170_v60  ;;  %v577_v20 = vpop.permute.xlu1 %576 }
 0x373   : > { %v582_v23 = vsel %vm468_vm4, %v577_v20, 0 }
 0x374   : > { %v462_v21 = vpack.c.bf16 %v461_v17, %v461_v17 }
 0x376   : > { %v688_v16 = vpop.xlane.xlu0 %687 }
 0x377   : > { %1181 = vrcp.f32 %v688_v16  ;;  %v1052_v16 = vld [vmem:[%s1391_s7] ss:$0 sm:$0xff] }
 0x379   : > { %v1180_v22 = vpop.eup %1179 }
 0x37a   : > { %v464_v18 = vpop.permute.xlu0 %463  ;;  %v574_v10 = vmul.f32 %v1180_v22, %v1172_v2 }
 0x37b   : > { %v470_v19 = vsel %vm468_vm4, %v464_v18, 0 }
 0x37c   : > { %1092 = vmatpush3.bf16.msra.mxu0 %v470_v19  ;;  %v575_v24 = vpack.c.bf16 %v574_v10, %v574_v10 }
 0x37d   : > { %1103 = vmatprep.subr.bf16.mxu0 %v1195_v1 }
 0x37e   : > { %v809_v30 = vpop.permute.xlu0 %808 }
 0x37f   : > { %1094 = vmatmul.mubr.msk.bf16.vlgmr.msra.gmra.mrb[4].mxu0 %vm404_vm2, %v462_v21  ;;  %v814_v32 = vsel %vm468_vm4, %v809_v30, 0 }
 0x380   : > { %1104 = vmatpush3.bf16.msra.mxu0 %v582_v23  ;;  %1105 = vmatprep.mubr.msk.bf16.mxu0 %vm1196_vm0, %v1195_v1 }
 0x381   : > { %1115 = vmatprep.subr.bf16.mxu0 %v1195_v1  ;;  %v1182_v25 = vpop.eup %1181 }
 0x382   : > { %v690_v27 = vmul.f32 %v1182_v25, %v1174_v5 }
 0x384   : > { %v691_v31 = vpack.c.bf16 %v690_v27, %v690_v27 }
 0x387   : > { %1106 = vmatmul.mubr.msk.bf16.vlgmr.msra.gmra.mrb[8].mxu0 %vm404_vm2, %v575_v24 }
 0x388   : > { %1117 = vmatprep.mubr.msk.bf16.mxu0 %vm1196_vm0, %v1195_v1 }
 0x3a3   : > { %v804_v26 = vpop.xlane.xlu1 %803 }
 0x3a4   : > { %1183 = vrcp.f32 %v804_v26 }
 0x3a7   : > { %v693_v28 = vpop.permute.xlu1 %692 }
 0x3a8   : > { %v698_v29 = vsel %vm468_vm4, %v693_v28, 0 }
 0x3a9   : > { %1116 = vmatpush3.bf16.msra.mxu0 %v698_v29 }
 0x3aa   : > { %1127 = vmatprep.subr.bf16.mxu0 %v1195_v1 }
 0x3ac   : > { %1118 = vmatmul.mubr.msk.bf16.vlgmr.msra.gmra.mrb[12].mxu0 %vm404_vm2, %v691_v31 }
 0x3ad   : > { %1128 = vmatpush3.bf16.msra.mxu0 %v814_v32  ;;  %1129 = vmatprep.mubr.msk.bf16.mxu0 %vm1196_vm0, %v1195_v1 }
 0x3ae   : > { %v1184_v33 = vpop.eup %1183 }
 0x3af   : > { %v806_v34 = vmul.f32 %v1184_v33, %v1176_v11 }
 0x3b1   : > { %v807_v35 = vpack.c.bf16 %v806_v34, %v806_v34 }
 0x3b4   : > { %1130 = vmatmul.mubr.msk.bf16.vlgmr.msra.gmra.mrb[16].mxu0 %vm404_vm2, %v807_v35 }
 0x452   : > { %v506_v36 = vpop.f32.mrb[4].mxu0 }
 0x453   : > { %512 = vst.msk [vmem:[#allocation2] sm:$0xff] %vm404_vm2, %v506_v36  ;;  %v1095_v37 = vpop.f32.mrb[5].mxu0 }
 0x454   : > { %v509_v38 = vpop.f32.mrb[6].mxu0 }
 0x455   : > { %v1096_v39 = vpop.f32.mrb[7].mxu0 }
 0x45a   : > { %v618_v40 = vpop.f32.mrb[8].mxu0 }
 0x45b   : > { %625 = vrot.lane.b32.xlu1 %v618_v40, %s1208_s12  ;;  %v1107_v41 = vpop.f32.mrb[9].mxu0 }
 0x45c   : > { %v621_v42 = vpop.f32.mrb[10].mxu0 }
 0x45d   : > { %v1108_v43 = vpop.f32.mrb[11].mxu0 }
 0x47f   : > { %v734_v46 = vpop.f32.mrb[12].mxu0 }
 0x480   : > { %741 = vrot.lane.b32.xlu0 %v734_v46, %s1209_s17  ;;  %v1119_v47 = vpop.f32.mrb[13].mxu0 }
 0x481   : > { %v737_v48 = vpop.f32.mrb[14].mxu0 }
 0x482   : > { %v1120_v49 = vpop.f32.mrb[15].mxu0 }
 0x487   : > { %v850_v50 = vpop.f32.mrb[16].mxu0 }
 0x488   : > { %857 = vrot.lane.b32.xlu1 %v850_v50, %s1210_s18  ;;  %v1131_v51 = vpop.f32.mrb[17].mxu0 }
 0x489   : > { %v853_v52 = vpop.f32.mrb[18].mxu0 }
 0x48a   : > { %v1132_v53 = vpop.f32.mrb[19].mxu0 }
 0x4cd   : > { %v626_v54 = vpop.permute.xlu1 %625 }
 0x4ce   : > { %629 = vst.msk [vmem:[#allocation2] sm:$0xff] %vm628_vm5, %v626_v54 }
 0x4f2   : > { %v742_v55 = vpop.permute.xlu0 %741 }
 0x4f3   : > { %745 = vst.msk [vmem:[#allocation2] sm:$0xff] %vm744_vm6, %v742_v55 }
 0x4fa   : > { %v858_v1 = vpop.permute.xlu1 %857 }
 0x4fb   : > { %861 = vst.msk [vmem:[#allocation2] sm:$0xff] %vm860_vm7, %v858_v1 }
 0x502   : > { %v862_v56 = vld [vmem:[#allocation2] sm:$0xff] }
 0x503   : > { %v863_v57 = vpack.c.bf16 %v862_v56, %v862_v56 }
 0x505   : > { %1138 = vmatmul.mubr.msk.bf16.vlgmr.msra.gmra.mrb[16].mxu1 %vm340_vm1, %v863_v57 }
 0x5d8   : > { %v924_v60 = vpop.f32.mrb[16].mxu1 }
 0x5d9   : > { %v925_v61 = vadd.f32 %v1047_v58, %v924_v60  ;;  %v1139_v62 = vpop.f32.mrb[17].mxu1 }
 0x5da   : > { %v927_v63 = vpop.f32.mrb[18].mxu1 }
 0x5db   : > { %v1140_v0 = vpop.f32.mrb[19].mxu1  ;;  %v931_v2 = vadd.f32 %v930_v59, %v925_v61 }
 0x5dd   : > { %v934_v4 = vsel %vm340_vm1, %v931_v2, 0.0 }
 0x5de   : > { %935 = vadd.xlane.f32.xlu0 %v934_v4 }
 0x66b   : > { %v936_v5 = vpop.xlane.xlu0 %935 }
 0x66c   : > { %v938_v6 = vmul.f32 0.03125, %v936_v5 }
 0x66e   : > { %v939_v7 = vsub.f32 %v931_v2, %v938_v6 }
 0x670   : > { %v940_v8 = vmul.f32 %v939_v7, %v939_v7 }
 0x672   : > { %v941_v9 = vsel %vm340_vm1, %v940_v8, 0.0 }
 0x673   : > { %942 = vadd.xlane.f32.xlu1 %v941_v9 }
 0x700   : > { %v943_v11 = vpop.xlane.xlu1 %942 }
 0x701   : > { %v944_v12 = vmul.f32 0.03125, %v943_v11 }
 0x703   : > { %v945_v3 = vadd.f32 1e-05, %v944_v12 }
 0x705   : > { %1185 = vrsqrt.f32 %v945_v3 }
 0x70f   : > { %v1186_v13 = vpop.eup %1185 }
 0x710   : > { %v947_v15 = vmul.f32 %v1186_v13, %v939_v7 }
 0x712   : > { %v954_v17 = vmul.f32 %v1051_v14, %v947_v15 }
 0x714   : > { %v961_v18 = vadd.f32 %v1052_v16, %v954_v17 }
 0x716   : > { %v962_v19 = vpack.c.bf16 %v961_v18, %v961_v18 }
 0x718   : > { %964 = vst.msk [vmem:[%s314_s29] sm:$0xf] %vm963_vm8, %v962_v19 }
 0x719 PF: > { %s18_s27 = sadd.s32 1, %s1193_s27  }
 0x71a   : > { %p15_p4 = scmp.ge.s32.totalorder %s18_s27, 4  }
 0x71c   :  { %17 = sbr.rel (!%p15_p4) target bundleno = 1 (0x1), region = 85 }

// kernel: transformer_forward.8
= control target key start
LH: loop header
LB: loop body
LE: loop exit
PB: predicated region body
PF: predicated region fallthrough
CT: control target
= control target key end

     0   :  { %s1392_s13 = smov 0   ;;  %s1531_s0 = inlined_call_operand.vmem [shape: bf16[2,8,32], index: 0, kind: input, shape index: {}]   ;;  %s1532_s1 = inlined_call_operand.vmem [shape: bf16[2,8,32], index: 1, kind: input, shape index: {}]   ;;  %s1533_s2 = inlined_call_operand.vmem [shape: bf16[32,32], index: 2, kind: input, shape index: {}]   ;;  %s1534_s3 = inlined_call_operand.vmem [shape: f32[1,32], index: 3, kind: input, shape index: {}]   ;;  %s1535_s4 = inlined_call_operand.vmem [shape: bf16[32,64], index: 4, kind: input, shape index: {}]   ;;  %s1536_s5 = inlined_call_operand.vmem [shape: f32[1,64], index: 5, kind: input, shape index: {}]   ;;  %s1537_s6 = inlined_call_operand.vmem [shape: bf16[32,32], index: 6, kind: input, shape index: {}]   ;;  %s1538_s7 = inlined_call_operand.vmem [shape: f32[1,32], index: 7, kind: input, shape index: {}]   ;;  %s1539_s8 = inlined_call_operand.vmem [shape: f32[1,32], index: 8, kind: input, shape index: {}]   ;;  %s1540_s9 = inlined_call_operand.vmem [shape: f32[1,32], index: 9, kind: input, shape index: {}]   ;;  %s1541_s10 = inlined_call_operand.vmem [shape: bf16[2,8,32], index: 10, kind: output, shape index: {}]  }
   0x1 LB: > { %s1144_s14 = sadd.s32 4294967295, %s1323_s13   ;;  %p1148_p0 = scmp.ge.s32.totalorder %s1323_s13, 1  ;;  %s1323_s13 = sphi %s1392_s13, %s20_s13  }
   0x2   : > { %p320_p1 = scmp.lt.s32.totalorder %s1323_s13, 3 }
   0x4   : > { %p321_p2 = pnand %p1148_p0, %p320_p1 }
   0x5   : > { %v1293_v0 = vld [vmem:[%s1535_s4] sm:$0xff] (!%p321_p2)   ;;  %v1325_v1 = vmov (!%p321_p2), 0.0   ;;  %v1295_v3 = vld [vmem:[%s1535_s4 + $0x8] sm:$0xff] (!%p321_p2)   ;;  %vm1326_vm0 = vmmov (!%p321_p2), 0   ;;  %p360_p3 = scmp.lt.s32.totalorder (!%p321_p2), %s1144_s14, 1  ;;  %vm398_vm1 = vcmask (!%p321_p2), 261120   ;;  %v508_v32 = vlaneseq (!%p321_p2) }
   0x6   : > { %324 = sbr.rel (%p321_p2) target bundleno = 1780 (0x6f4), region = 60  ;;  %1209 = vmatprep.subr.bf16.mxu1 (!%p321_p2), %v1325_v1  ;;  %1201 = vmatprep.subr.bf16.mxu0 (!%p321_p2), %v1325_v1  ;;  %v1294_v2 = vld [vmem:[%s1533_s2] sm:$0xff] (!%p321_p2)   ;;  %v1296_v4 = vld [vmem:[%s1533_s2 + $0x8] sm:$0xff] (!%p321_p2)   ;;  %vm517_vm2 = vcmask (!%p321_p2), 64512   ;;  %s1327_s15 = smov (!%p321_p2), 112   ;;  %vm582_vm4 = vcmask (!%p321_p2), 1043456  }
   0x7   : > { %1210 = vmatpush3.bf16.msra.mxu1 (!%p321_p2), %v1293_v0  ;;  %1213 = vmatprep.mubr.msk.bf16.mxu1 (!%p321_p2), %vm1326_vm0, %v1325_v1  ;;  %v1156_v7 = vld [vmem:[%s1536_s5] ss:$0 sm:$0xff] (!%p321_p2)  ;;  %s1328_s16 = smov (!%p321_p2), 120   ;;  %s1329_s17 = smov (!%p321_p2), 104   ;;  %v509_v33 = vshrl.u32 (!%p321_p2), %v508_v32, 7  ;;  %v511_v34 = vand.u32 (!%p321_p2), 127, %v508_v32 }
   0x8   : > { %1202 = vmatpush3.bf16.msra.mxu0 (!%p321_p2), %v1294_v2  ;;  %1211 = vmatprep.subr.bf16.mxu1 (!%p321_p2), %v1325_v1  ;;  %v1152_v8 = vld [vmem:[%s1534_s3] ss:$0 sm:$0xff] (!%p321_p2)  ;;  %s1330_s18 = smov (!%p321_p2), 96   ;;  %s1331_s19 = smov (!%p321_p2), 80   ;;  %vm742_vm5 = vcmask (!%p321_p2), 130112   ;;  %vm858_vm6 = vcmask (!%p321_p2), 195712  }
   0x9   : > { %1203 = vmatprep.subr.bf16.mxu0 (!%p321_p2), %v1325_v1  ;;  %1205 = vmatprep.mubr.msk.bf16.mxu0 (!%p321_p2), %vm1326_vm0, %v1325_v1  ;;  %vm512_vm3 = vcmp.gt.s32.totalorder (!%p321_p2), %v511_v34, %v509_v33  ;;  %s1332_s20 = smov (!%p321_p2), 72   ;;  %s1333_s21 = smov (!%p321_p2), 88   ;;  %vm974_vm7 = vcmask (!%p321_p2), 261312   ;;  %vm1077_vm8 = vcmask (!%p321_p2), 257024  }
   0xa   : > { %v513_v35 = vsel (!%p321_p2), %vm512_vm3, -1e+30, %v1325_v1  ;;  %s1334_s22 = smov (!%p321_p2), 8   ;;  %s1335_s28 = smov (!%p321_p2), 16  }
   0xb   : > { %1212 = vmatpush3.bf16.msra.mxu1 (!%p321_p2), %v1295_v3 }
   0xc   : > { %1204 = vmatpush3.bf16.msra.mxu0 (!%p321_p2), %v1296_v4  ;;  %1223 = vmatprep.subr.bf16.mxu1 (!%p321_p2), %v1325_v1 }
   0xd   : > { %s1543_s14 = smov (!%p360_p3, %s1144_s14), 1  ;;  %1217 = vmatprep.subr.bf16.mxu0 %v1325_v1 }
   0xe   : > { %s1420_s23 = sshll.u32 %s1543_s14, 2 }
   0xf   : > { %s367_s26 = scalar_lea.vmem %s1532_s1, %s1420_s23  ;;  %s363_s29 = scalar_lea.vmem %s1531_s0, %s1420_s23 }
  0x10   : > { %v374_v5 = vld [vmem:[%s367_s26] sm:$0xf] }
  0x11   : > { %1214 = vmatmul.mubr.msk.bf16.vlgmr.msra.gmra.mrb[0].mxu1 %vm398_vm1, %v374_v5  ;;  %v1433_v6 = vld [vmem:[%s363_s29] sm:$0xf]  ;;  %s1336_s29 = smov 24  }
  0x12   : > { %1206 = vmatmul.mubr.msk.bf16.vlgmr.msra.gmra.mrb[0].mxu0 %vm398_vm1, %v1433_v6  ;;  %1225 = vmatprep.mubr.msk.bf16.mxu1 %vm1326_vm0, %v1325_v1 }
  0x13   : > { %1219 = vmatprep.mubr.msk.bf16.mxu0 %vm1326_vm0, %v1325_v1 }
  0xe4   : > { %v502_v9 = vpop.f32.mrb[0].mxu1 }
  0xe5   : > { %v503_v10 = vadd.f32 %v1156_v7, %v502_v9  ;;  %v1215_v11 = vpop.f32.mrb[1].mxu1  ;;  %v436_v12 = vpop.f32.mrb[0].mxu0 }
  0xe6   : > { %v437_v13 = vadd.f32 %v1152_v8, %v436_v12  ;;  %v505_v14 = vpop.f32.mrb[2].mxu1  ;;  %v1207_v15 = vpop.f32.mrb[1].mxu0 }
  0xe7   : > { %v1447_v16 = vpack.c.bf16 %v503_v10, %v503_v10  ;;  %v1216_v17 = vpop.f32.mrb[3].mxu1  ;;  %v439_v18 = vpop.f32.mrb[2].mxu0 }
  0xe8   : > { %v514_v19 = vmul.f32 0.35355338, %v437_v13  ;;  %v1208_v20 = vpop.f32.mrb[3].mxu0 }
  0xe9   : > { %746 = vrot.lane.b32.xlu1 %v1447_v16, %s1327_s15  ;;  %630 = vrot.lane.b32.xlu0 %v1447_v16, %s1328_s16  ;;  %v522_v21 = vsel %vm517_vm2, %v1447_v16, 0 }
  0xea   : > { %v515_v22 = vpack.c.bf16 %v514_v19, %v514_v19  ;;  %1218 = vmatpush3.bf16.xpose.msra.mxu0 %v522_v21 }
  0xeb   : > { %1229 = vmatprep.subr.bf16.mxu0 %v1325_v1 }
  0xed   : > { %744 = vrot.lane.b32.xlu1 %v515_v22, %s1327_s15  ;;  %628 = vrot.lane.b32.xlu0 %v515_v22, %s1328_s16 }
  0xf1   : > { %860 = vrot.lane.b32.xlu1 %v515_v22, %s1329_s17  ;;  %862 = vrot.lane.b32.xlu0 %v1447_v16, %s1329_s17 }
  0xf2   : > { %1220 = vmatmul.mubr.msk.bf16.vlgmr.msra.gmra.mrb[4].mxu0 %vm517_vm2, %v515_v22 }
  0xf3   : > { %1231 = vmatprep.mubr.msk.bf16.mxu0 %vm1326_vm0, %v1325_v1 }
 0x15b   : > { %v631_v23 = vpop.permute.xlu0 %630  ;;  %v747_v25 = vpop.permute.xlu1 %746 }
 0x15c   : > { %v636_v24 = vsel %vm517_vm2, %v631_v23, 0  ;;  %v752_v27 = vsel %vm517_vm2, %v747_v25, 0 }
 0x15d   : > { %1230 = vmatpush3.bf16.xpose.msra.mxu0 %v636_v24 }
 0x15e   : > { %1241 = vmatprep.subr.bf16.mxu0 %v1325_v1 }
 0x15f   : > { %v629_v26 = vpop.permute.xlu0 %628  ;;  %v745_v29 = vpop.permute.xlu1 %744 }
 0x163   : > { %v863_v28 = vpop.permute.xlu0 %862  ;;  %v861_v31 = vpop.permute.xlu1 %860 }
 0x164   : > { %1232 = vmatmul.mubr.msk.bf16.vlgmr.msra.gmra.mrb[8].mxu0 %vm517_vm2, %v629_v26  ;;  %v868_v30 = vsel %vm517_vm2, %v863_v28, 0 }
 0x165   : > { %1242 = vmatpush3.bf16.xpose.msra.mxu0 %v752_v27  ;;  %1243 = vmatprep.mubr.msk.bf16.mxu0 %vm1326_vm0, %v1325_v1 }
 0x166   : > { %1253 = vmatprep.subr.bf16.mxu0 %v1325_v1 }
 0x16c   : > { %1244 = vmatmul.mubr.msk.bf16.vlgmr.msra.gmra.mrb[12].mxu0 %vm517_vm2, %v745_v29 }
 0x16d   : > { %1254 = vmatpush3.bf16.xpose.msra.mxu0 %v868_v30  ;;  %1255 = vmatprep.mubr.msk.bf16.mxu0 %vm1326_vm0, %v1325_v1 }
 0x16e   : > { %1265 = vmatprep.subr.bf16.mxu0 %v1325_v1 }
 0x174   : > { %1256 = vmatmul.mubr.msk.bf16.vlgmr.msra.gmra.mrb[16].mxu0 %vm517_vm2, %v861_v31 }
 0x175   : > { %1269 = vmatprep.mubr.msk.bf16.mxu0 %vm1326_vm0, %v1325_v1 }
 0x1c5   : > { %v558_v36 = vpop.f32.mrb[4].mxu0 }
 0x1c6   : > { %v559_v37 = vadd.f32 %v558_v36, %v513_v35  ;;  %v1221_v38 = vpop.f32.mrb[5].mxu0 }
 0x1c7   : > { %v561_v39 = vpop.f32.mrb[6].mxu0 }
 0x1c8   : > { %v1222_v40 = vpop.f32.mrb[7].mxu0  ;;  %v564_v41 = vsel %vm517_vm2, %v559_v37, -inf }
 0x1c9   : > { %565 = vmax.xlane.f32.xlu0 %v564_v41 }
 0x237   : > { %v672_v42 = vpop.f32.mrb[8].mxu0 }
 0x238   : > { %v673_v43 = vadd.f32 %v672_v42, %v513_v35  ;;  %v1233_v44 = vpop.f32.mrb[9].mxu0 }
 0x239   : > { %v675_v45 = vpop.f32.mrb[10].mxu0 }
 0x23a   : > { %v1234_v46 = vpop.f32.mrb[11].mxu0  ;;  %v678_v47 = vsel %vm517_vm2, %v673_v43, -inf }
 0x23b   : > { %679 = vmax.xlane.f32.xlu1 %v678_v47 }
 0x23f   : > { %v788_v48 = vpop.f32.mrb[12].mxu0 }
 0x240   : > { %v789_v49 = vadd.f32 %v788_v48, %v513_v35  ;;  %v1245_v50 = vpop.f32.mrb[13].mxu0 }
 0x241   : > { %v791_v51 = vpop.f32.mrb[14].mxu0  ;;  %v1297_v50 = vld [vmem:[%s1537_s6] sm:$0xff]  }
 0x242   : > { %v1246_v52 = vpop.f32.mrb[15].mxu0  ;;  %v794_v53 = vsel %vm517_vm2, %v789_v49, -inf  ;;  %1266 = vmatpush3.bf16.msra.mxu0 %v1297_v50  ;;  %v1298_v51 = vld [vmem:[%s1537_s6 + $0x8] sm:$0xff]  }
 0x243   : > { %795 = vmax.xlane.f32.xlu0 %v794_v53  ;;  %1267 = vmatprep.subr.bf16.mxu0 %v1325_v1 }
 0x246   : > { %1268 = vmatpush3.bf16.msra.mxu0 %v1298_v51 }
 0x247   : > { %v904_v54 = vpop.f32.mrb[16].mxu0 }
 0x248   : > { %v905_v55 = vadd.f32 %v904_v54, %v513_v35  ;;  %v1257_v56 = vpop.f32.mrb[17].mxu0 }
 0x249   : > { %v907_v57 = vpop.f32.mrb[18].mxu0 }
 0x24a   : > { %v1258_v58 = vpop.f32.mrb[19].mxu0  ;;  %v910_v59 = vsel %vm517_vm2, %v905_v55, -inf }
 0x24b   : > { %911 = vmax.xlane.f32.xlu0 %v910_v59 }
 0x256   : > { %v566_v60 = vpop.xlane.xlu0 %565 }
 0x257   : > { %v567_v61 = vsub.f32 %v559_v37, %v566_v60 }
 0x259   : > { %v568_v62 = vmul.f32 1.442695, %v567_v61 }
 0x25b   : > { %1299 = vpow2.f32 %v568_v62 }
 0x265   : > { %v1300_v63 = vpop.eup %1299 }
 0x266   : > { %v570_v0 = vsel %vm517_vm2, %v1300_v63, 0.0 }
 0x267   : > { %571 = vadd.xlane.f32.xlu1 %v570_v0  ;;  %v1168_v0 = vld [vmem:[%s1538_s7] ss:$0 sm:$0xff] }
 0x278   : > { %577 = vrot.lane.b32.xlu1 %v1447_v16, %s1330_s18 }
 0x2c8   : > { %v680_v2 = vpop.xlane.xlu1 %679 }
 0x2c9   : > { %v681_v3 = vsub.f32 %v673_v43, %v680_v2  ;;  %v1044_v2 = vunpack.c.l.bf16 %v1433_v6 }
 0x2cb   : > { %v682_v4 = vmul.f32 1.442695, %v681_v3 }
 0x2cd   : > { %1301 = vpow2.f32 %v682_v4 }
 0x2d0   : > { %v796_v5 = vpop.xlane.xlu0 %795 }
 0x2d1   : > { %v797_v7 = vsub.f32 %v789_v49, %v796_v5 }
 0x2d3   : > { %v798_v8 = vmul.f32 1.442695, %v797_v7 }
 0x2d5   : > { %1303 = vpow2.f32 %v798_v8 }
 0x2d7   : > { %v1302_v9 = vpop.eup %1301 }
 0x2d8   : > { %v912_v10 = vpop.xlane.xlu0 %911  ;;  %v684_v11 = vsel %vm517_vm2, %v1302_v9, 0.0 }
 0x2d9   : > { %v913_v12 = vsub.f32 %v905_v55, %v912_v10  ;;  %685 = vadd.xlane.f32.xlu0 %v684_v11 }
 0x2db   : > { %v914_v13 = vmul.f32 1.442695, %v913_v12 }
 0x2dd   : > { %1305 = vpow2.f32 %v914_v13 }
 0x2df   : > { %v1304_v14 = vpop.eup %1303 }
 0x2e0   : > { %v800_v15 = vsel %vm517_vm2, %v1304_v14, 0.0 }
 0x2e1   : > { %801 = vadd.xlane.f32.xlu1 %v800_v15 }
 0x2e7   : > { %v1306_v17 = vpop.eup %1305 }
 0x2e8   : > { %v916_v18 = vsel %vm517_vm2, %v1306_v17, 0.0 }
 0x2e9   : > { %917 = vadd.xlane.f32.xlu0 %v916_v18 }
 0x2f2   : > { %806 = vrot.lane.b32.xlu1 %v1447_v16, %s1331_s19  ;;  %s371_s19 = scalar_lea.vmem %s1541_s10, %s1420_s23 }
 0x2f4   : > { %v572_v19 = vpop.xlane.xlu1 %571 }
 0x2f5   : > { %1307 = vrcp.f32 %v572_v19 }
 0x2f6   : > { %922 = vrot.lane.b32.xlu1 %v1447_v16, %s1332_s20 }
 0x2f8   : > { %v578_v20 = vpop.permute.xlu1 %577 }
 0x2f9   : > { %v584_v21 = vsel %vm582_vm4, %v578_v20, 0  ;;  %v1172_v20 = vld [vmem:[%s1539_s8] ss:$0 sm:$0xff] }
 0x2fa   : > { %1224 = vmatpush3.bf16.msra.mxu1 %v584_v21 }
 0x2fb   : > { %1235 = vmatprep.subr.bf16.mxu1 %v1325_v1 }
 0x2ff   : > { %v1308_v22 = vpop.eup %1307  ;;  %690 = vrot.lane.b32.xlu0 %v1447_v16, %s1333_s21 }
 0x300   : > { %v574_v23 = vmul.f32 %v1308_v22, %v1300_v63  ;;  %v1173_v22 = vld [vmem:[%s1540_s9] ss:$0 sm:$0xff] }
 0x302   : > { %v575_v24 = vpack.c.bf16 %v574_v23, %v574_v23 }
 0x304   : > { %1226 = vmatmul.mubr.msk.bf16.vlgmr.msra.gmra.mrb[4].mxu1 %vm517_vm2, %v575_v24 }
 0x305   : > { %1237 = vmatprep.mubr.msk.bf16.mxu1 %vm1326_vm0, %v1325_v1 }
 0x366   : > { %v686_v25 = vpop.xlane.xlu0 %685 }
 0x367   : > { %1309 = vrcp.f32 %v686_v25 }
 0x36e   : > { %v802_v26 = vpop.xlane.xlu1 %801 }
 0x36f   : > { %1311 = vrcp.f32 %v802_v26 }
 0x371   : > { %v1310_v27 = vpop.eup %1309 }
 0x372   : > { %v688_v29 = vmul.f32 %v1310_v27, %v1302_v9  ;;  %v807_v32 = vpop.permute.xlu1 %806 }
 0x373   : > { %v812_v34 = vsel %vm582_vm4, %v807_v32, 0 }
 0x374   : > { %v689_v16 = vpack.c.bf16 %v688_v29, %v688_v29 }
 0x376   : > { %v918_v28 = vpop.xlane.xlu0 %917  ;;  %v923_v36 = vpop.permute.xlu1 %922 }
 0x377   : > { %1313 = vrcp.f32 %v918_v28  ;;  %v928_v39 = vsel %vm582_vm4, %v923_v36, 0 }
 0x379   : > { %v1312_v33 = vpop.eup %1311 }
 0x37a   : > { %v691_v30 = vpop.permute.xlu0 %690  ;;  %v804_v35 = vmul.f32 %v1312_v33, %v1304_v14 }
 0x37b   : > { %v696_v31 = vsel %vm582_vm4, %v691_v30, 0 }
 0x37c   : > { %1236 = vmatpush3.bf16.msra.mxu1 %v696_v31  ;;  %v805_v37 = vpack.c.bf16 %v804_v35, %v804_v35 }
 0x37d   : > { %1247 = vmatprep.subr.bf16.mxu1 %v1325_v1 }
 0x37f   : > { %1238 = vmatmul.mubr.msk.bf16.vlgmr.msra.gmra.mrb[8].mxu1 %vm517_vm2, %v689_v16 }
 0x380   : > { %1248 = vmatpush3.bf16.msra.mxu1 %v812_v34  ;;  %1249 = vmatprep.mubr.msk.bf16.mxu1 %vm1326_vm0, %v1325_v1 }
 0x381   : > { %1259 = vmatprep.subr.bf16.mxu1 %v1325_v1  ;;  %v1314_v38 = vpop.eup %1313 }
 0x382   : > { %v920_v40 = vmul.f32 %v1314_v38, %v1306_v17 }
 0x384   : > { %v921_v41 = vpack.c.bf16 %v920_v40, %v920_v40 }
 0x387   : > { %1250 = vmatmul.mubr.msk.bf16.vlgmr.msra.gmra.mrb[12].mxu1 %vm517_vm2, %v805_v37 }
 0x388   : > { %1260 = vmatpush3.bf16.msra.mxu1 %v928_v39  ;;  %1261 = vmatprep.mubr.msk.bf16.mxu1 %vm1326_vm0, %v1325_v1 }
 0x38f   : > { %1262 = vmatmul.mubr.msk.bf16.vlgmr.msra.gmra.mrb[16].mxu1 %vm517_vm2, %v921_v41 }
 0x3d7   : > { %v620_v42 = vpop.f32.mrb[4].mxu1 }
 0x3d8   : > { %626 = vst.msk [vmem:[#allocation2] sm:$0xff] %vm517_vm2, %v620_v42  ;;  %v1227_v43 = vpop.f32.mrb[5].mxu1 }
 0x3d9   : > { %v623_v44 = vpop.f32.mrb[6].mxu1 }
 0x3da   : > { %v1228_v45 = vpop.f32.mrb[7].mxu1 }
 0x452   : > { %v732_v46 = vpop.f32.mrb[8].mxu1 }
 0x453   : > { %739 = vrot.lane.b32.xlu0 %v732_v46, %s1334_s22  ;;  %v1239_v47 = vpop.f32.mrb[9].mxu1 }
 0x454   : > { %v735_v48 = vpop.f32.mrb[10].mxu1 }
 0x455   : > { %v1240_v49 = vpop.f32.mrb[11].mxu1 }
 0x45a   : > { %v848_v52 = vpop.f32.mrb[12].mxu1 }
 0x45b   : > { %855 = vrot.lane.b32.xlu1 %v848_v52, %s1335_s28  ;;  %v1251_v53 = vpop.f32.mrb[13].mxu1 }
 0x45c   : > { %v851_v54 = vpop.f32.mrb[14].mxu1 }
 0x45d   : > { %v1252_v55 = vpop.f32.mrb[15].mxu1 }
 0x462   : > { %v964_v56 = vpop.f32.mrb[16].mxu1 }
 0x463   : > { %971 = vrot.lane.b32.xlu0 %v964_v56, %s1336_s29  ;;  %v1263_v57 = vpop.f32.mrb[17].mxu1 }
 0x464   : > { %v967_v58 = vpop.f32.mrb[18].mxu1 }
 0x465   : > { %v1264_v59 = vpop.f32.mrb[19].mxu1 }
 0x4c5   : > { %v740_v60 = vpop.permute.xlu0 %739 }
 0x4c6   : > { %743 = vst.msk [vmem:[#allocation2] sm:$0xff] %vm742_vm5, %v740_v60 }
 0x4cd   : > { %v856_v61 = vpop.permute.xlu1 %855 }
 0x4ce   : > { %859 = vst.msk [vmem:[#allocation2] sm:$0xff] %vm858_vm6, %v856_v61 }
 0x4d5   : > { %v972_v1 = vpop.permute.xlu0 %971 }
 0x4d6   : > { %975 = vst.msk [vmem:[#allocation2] sm:$0xff] %vm974_vm7, %v972_v1 }
 0x4dd   : > { %v976_v62 = vld [vmem:[#allocation2] sm:$0xff] }
 0x4de   : > { %v977_v63 = vpack.c.bf16 %v976_v62, %v976_v62 }
 0x4e0   : > { %1270 = vmatmul.mubr.msk.bf16.vlgmr.msra.gmra.mrb[20].mxu0 %vm398_vm1, %v977_v63 }
 0x5b3   : > { %v1038_v3 = vpop.f32.mrb[20].mxu0 }
 0x5b4   : > { %v1039_v4 = vadd.f32 %v1168_v0, %v1038_v3  ;;  %v1271_v5 = vpop.f32.mrb[21].mxu0 }
 0x5b5   : > { %v1041_v7 = vpop.f32.mrb[22].mxu0 }
 0x5b6   : > { %v1272_v8 = vpop.f32.mrb[23].mxu0  ;;  %v1045_v9 = vadd.f32 %v1044_v2, %v1039_v4 }
 0x5b8   : > { %v1048_v10 = vsel %vm398_vm1, %v1045_v9, 0.0 }
 0x5b9   : > { %1049 = vadd.xlane.f32.xlu1 %v1048_v10 }
 0x646   : > { %v1050_v11 = vpop.xlane.xlu1 %1049 }
 0x647   : > { %v1052_v12 = vmul.f32 0.03125, %v1050_v11 }
 0x649   : > { %v1053_v13 = vsub.f32 %v1045_v9, %v1052_v12 }
 0x64b   : > { %v1054_v14 = vmul.f32 %v1053_v13, %v1053_v13 }
 0x64d   : > { %v1055_v15 = vsel %vm398_vm1, %v1054_v14, 0.0 }
 0x64e   : > { %1056 = vadd.xlane.f32.xlu0 %v1055_v15 }
 0x6db   : > { %v1057_v17 = vpop.xlane.xlu0 %1056 }
 0x6dc   : > { %v1058_v18 = vmul.f32 0.03125, %v1057_v17 }
 0x6de   : > { %v1059_v6 = vadd.f32 1e-05, %v1058_v18 }
 0x6e0   : > { %1315 = vrsqrt.f32 %v1059_v6 }
 0x6ea   : > { %v1316_v19 = vpop.eup %1315 }
 0x6eb   : > { %v1061_v21 = vmul.f32 %v1316_v19, %v1053_v13 }
 0x6ed   : > { %v1068_v23 = vmul.f32 %v1172_v20, %v1061_v21 }
 0x6ef   : > { %v1075_v24 = vadd.f32 %v1173_v22, %v1068_v23 }
 0x6f1   : > { %v1076_v25 = vpack.c.bf16 %v1075_v24, %v1075_v24 }
 0x6f3   : > { %1078 = vst.msk [vmem:[%s371_s19] sm:$0xf] %vm1077_vm8, %v1076_v25 }
 0x6f4 PF: > { %s20_s13 = sadd.s32 1, %s1323_s13  }
 0x6f5   : > { %p17_p4 = scmp.ge.s32.totalorder %s20_s13, 4  }
 0x6f7   :  { %19 = sbr.rel (!%p17_p4) target bundleno = 1 (0x1), region = 93 }

</bundles_post_ra>
